<compile_context>
chip_gen: v6e
topology: v6e:2x2x1
jax: 0.10.0
libtpu: 0.0.40
codegen_flags: <defaults>
</compile_context>

<pallas_src>
import jax
import jax.numpy as jnp
from jax.experimental import pallas as pl
from jax.experimental.pallas import tpu as pltpu

# MOSI-style modality feature dims; must sum to 870 to match MLP(870, 870, 1).
D_V, D_A, D_T = 300, 300, 270
IN_DIM = D_V + D_A + D_T            # 870
HID_DIM = 870
OUT_DIM = 1

IN_PAD = 896                        # 870 padded up to a multiple of 128
HID_PAD = 896


def _round_up(x, m):
    return (x + m - 1) // m * m


def _mosi_kernel(x_ref, w1_ref, b1_ref, w2_ref, b2_ref, o_ref):
    # Layer 1: single MXU matmul, bf16 operands, f32 accumulation.
    h = jnp.dot(x_ref[...], w1_ref[...], preferred_element_type=jnp.float32)
    # Bias + ReLU in f32 on the VPU.
    h = jnp.maximum(h + b1_ref[...], 0.0)
    # Layer 2 (N=1): VPU multiply + lane reduction instead of a 1-column MXU matmul.
    y = jnp.sum(h * w2_ref[...], axis=-1, keepdims=True) + b2_ref[...]
    o_ref[...] = y.astype(o_ref.dtype)


def prepare_params(params):
    """One-time (outside the hot path) padding 870->896 and bf16 cast of W1."""
    w1, b1, w2, b2 = params
    w1p = jnp.zeros((IN_PAD, HID_PAD), jnp.float32)
    w1p = w1p.at[:IN_DIM, :HID_DIM].set(w1.astype(jnp.float32)).astype(jnp.bfloat16)
    b1p = jnp.zeros((1, HID_PAD), jnp.float32).at[0, :HID_DIM].set(
        b1.reshape(-1).astype(jnp.float32))
    # W2 stored as a row vector for the in-kernel VPU reduction.
    w2p = jnp.zeros((1, HID_PAD), jnp.float32).at[0, :HID_DIM].set(
        w2.reshape(-1).astype(jnp.float32))
    b2p = b2.reshape(1, 1).astype(jnp.float32)
    return w1p, b1p, w2p, b2p


def global_model_for_mosi(input_list, prepared_params, *, tm=128):
    """input_list: [vision, audio, text] arrays with leading batch dim (trailing dims
    are flattened, matching torch.flatten(m, start_dim=1) + torch.cat(dim=1))."""
    w1p, b1p, w2p, b2p = prepared_params

    # Concat fusion (tiny: ~B*870*4 bytes) done in XLA; kernel sees one dense slab.
    x = jnp.concatenate(
        [m.reshape(m.shape[0], -1).astype(jnp.float32) for m in input_list], axis=1)
    B, D = x.shape
    assert D == IN_DIM, f"expected {IN_DIM} fused features, got {D}"

    # Batch tile: 128 rows per grid step for large batches, one padded step otherwise.
    tm_eff = tm if B > tm else max(8, _round_up(B, 8))
    b_pad = _round_up(B, tm_eff)
    x = jnp.pad(x, ((0, b_pad - B), (0, IN_PAD - IN_DIM))).astype(jnp.bfloat16)

    grid = (b_pad // tm_eff,)

    out = pl.pallas_call(
        _mosi_kernel,
        out_shape=jax.ShapeDtypeStruct((b_pad, OUT_DIM), jnp.float32),
        grid_spec=pltpu.PrefetchScalarGridSpec(
            num_scalar_prefetch=0,
            grid=grid,
            in_specs=[
                pl.BlockSpec((tm_eff, IN_PAD), lambda i: (i, 0)),   # x: tiled over batch
                pl.BlockSpec((IN_PAD, HID_PAD), lambda i: (0, 0)),  # W1: resident
                pl.BlockSpec((1, HID_PAD), lambda i: (0, 0)),       # b1
                pl.BlockSpec((1, HID_PAD), lambda i: (0, 0)),       # w2 (row vector)
                pl.BlockSpec((1, 1), lambda i: (0, 0)),             # b2
            ],
            out_specs=pl.BlockSpec((tm_eff, OUT_DIM), lambda i: (i, 0)),
        ),
        compiler_params=pltpu.CompilerParams(
            dimension_semantics=("parallel",),
        ),
    )(x, w1p, b1p, w2p, b2p)

    return out[:B]


def init_params(key):
    # Deterministic init mimicking nn.Linear's default U(-1/sqrt(fan_in), 1/sqrt(fan_in)).
    k1, k2, k3, k4 = jax.random.split(key, 4)
    bound1 = 1.0 / jnp.sqrt(float(IN_DIM))
    w1 = jax.random.uniform(k1, (IN_DIM, HID_DIM), jnp.float32, -bound1, bound1)
    b1 = jax.random.uniform(k2, (HID_DIM,), jnp.float32, -bound1, bound1)
    bound2 = 1.0 / jnp.sqrt(float(HID_DIM))
    w2 = jax.random.uniform(k3, (HID_DIM, OUT_DIM), jnp.float32, -bound2, bound2)
    b2 = jax.random.uniform(k4, (OUT_DIM,), jnp.float32, -bound2, bound2)
    return w1, b1, w2, b2


def _reference_fp32(input_list, params):
    # Pure-JAX f32 reference of the PyTorch forward (Concat -> Linear -> ReLU -> Linear).
    w1, b1, w2, b2 = params
    x = jnp.concatenate([m.reshape(m.shape[0], -1) for m in input_list], axis=1)
    h = jnp.maximum(x @ w1 + b1.reshape(1, -1), 0.0)
    return h @ w2 + b2.reshape(1, -1)


def _reference_bf16(input_list, params):
    # Same math but with the kernel's bf16 quantization of x and W1 (f32 accumulation).
    w1, b1, w2, b2 = params
    x = jnp.concatenate([m.reshape(m.shape[0], -1) for m in input_list], axis=1)
    xq = x.astype(jnp.bfloat16).astype(jnp.float32)
    w1q = w1.astype(jnp.bfloat16).astype(jnp.float32)
    h = jnp.maximum(xq @ w1q + b1.reshape(1, -1), 0.0)
    return h @ w2 + b2.reshape(1, -1)


if __name__ == "__main__":
    key = jax.random.PRNGKey(0)
    kp, kv, ka, kt = jax.random.split(key, 4)

    B = 8
    # Small, MOSI-shaped synthetic modalities; vision kept 3-D to exercise flatten.
    vision = jax.random.normal(kv, (B, 20, 15), jnp.float32)   # flattens to (B, 300)
    audio = jax.random.normal(ka, (B, D_A), jnp.float32)       # (B, 300)
    text = jax.random.normal(kt, (B, D_T), jnp.float32)        # (B, 270)
    input_list = [vision, audio, text]

    params = init_params(kp)
    prepared = prepare_params(params)   # offline: pad + bf16 cast, outside hot path

    out = global_model_for_mosi(input_list, prepared)
    out = jax.block_until_ready(out)
    assert out.shape == (B, OUT_DIM)

    # Tight check vs a reference using the same bf16-quantized weights/inputs.
    ref_q = _reference_bf16(input_list, params)
    assert bool(jnp.allclose(out, ref_q, atol=1e-3, rtol=1e-3)), "mismatch vs bf16 reference"

    # Loose accuracy check vs the full-f32 PyTorch-equivalent reference.
    ref_f32 = _reference_fp32(input_list, params)
    assert bool(jnp.allclose(out, ref_f32, atol=3e-2, rtol=3e-2)), "drifted from f32 reference"

    print("KERNEL_OK")
</pallas_src>

<mosaic_0001>
module attributes {stable_mosaic.version = 11 : i64} {
  func.func @_mosi_kernel(%arg0: i32, %arg1: memref<8x896xbf16, #tpu.memory_space<vmem>>, %arg2: memref<896x896xbf16, #tpu.memory_space<vmem>>, %arg3: memref<1x896xf32, #tpu.memory_space<vmem>>, %arg4: memref<1x896xf32, #tpu.memory_space<vmem>>, %arg5: memref<1x1xf32, #tpu.memory_space<vmem>>, %arg6: memref<8x1xf32, #tpu.memory_space<vmem>>) attributes {dimension_semantics = [#tpu.dimension_semantics<parallel>], iteration_bounds = array<i64: 1>, scalar_prefetch = 0 : i64, scratch_operands = 0 : i64, tpu.core_type = #tpu.core_type<tc>, window_params = [{transform_indices = @transform_0, window_bounds = array<i64: 8, 896>}, {pipeline_mode = #tpu.pipeline_mode<synchronous>, transform_indices = @transform_1, window_bounds = array<i64: 896, 896>}, {pipeline_mode = #tpu.pipeline_mode<synchronous>, transform_indices = @transform_2, window_bounds = array<i64: 1, 896>}, {pipeline_mode = #tpu.pipeline_mode<synchronous>, transform_indices = @transform_3, window_bounds = array<i64: 1, 896>}, {pipeline_mode = #tpu.pipeline_mode<synchronous>, transform_indices = @transform_4, window_bounds = array<i64: 1, 1>}, {transform_indices = @transform_5, window_bounds = array<i64: 8, 1>}]} {
    %c0 = arith.constant 0 : index
    %c0_0 = arith.constant 0 : index
    %0 = vector.load %arg1[%c0, %c0_0] : memref<8x896xbf16, #tpu.memory_space<vmem>>, vector<8x896xbf16>
    %c0_1 = arith.constant 0 : index
    %c0_2 = arith.constant 0 : index
    %1 = vector.load %arg2[%c0_1, %c0_2] : memref<896x896xbf16, #tpu.memory_space<vmem>>, vector<896x896xbf16>
    %cst = arith.constant dense<0.000000e+00> : vector<8x896xf32>
    %2 = tpu.matmul %0, %1, %cst {dimension_numbers = #tpu.dot_dimension_numbers<[1], [0], [0], [1], [0, 0, 1, 1], [], []>} : vector<8x896xbf16>, vector<896x896xbf16>, vector<8x896xf32> -> vector<8x896xf32>
    %c0_3 = arith.constant 0 : index
    %c0_4 = arith.constant 0 : index
    %3 = vector.load %arg3[%c0_3, %c0_4] : memref<1x896xf32, #tpu.memory_space<vmem>>, vector<1x896xf32>
    %4 = vector.broadcast %3 : vector<1x896xf32> to vector<8x896xf32>
    %5 = arith.addf %2, %4 : vector<8x896xf32>
    %cst_5 = arith.constant 0.000000e+00 : f32
    %6 = vector.broadcast %cst_5 : f32 to vector<8x896xf32>
    %7 = arith.maximumf %5, %6 : vector<8x896xf32>
    %c0_6 = arith.constant 0 : index
    %c0_7 = arith.constant 0 : index
    %8 = vector.load %arg4[%c0_6, %c0_7] : memref<1x896xf32, #tpu.memory_space<vmem>>, vector<1x896xf32>
    %9 = vector.broadcast %8 : vector<1x896xf32> to vector<8x896xf32>
    %10 = arith.mulf %7, %9 : vector<8x896xf32>
    %cst_8 = arith.constant dense<0.000000e+00> : vector<8xf32>
    %11 = vector.multi_reduction <add>, %10, %cst_8 [1] : vector<8x896xf32> to vector<8xf32>
    %12 = vector.shape_cast %11 : vector<8xf32> to vector<8x1xf32>
    %c0_9 = arith.constant 0 : index
    %c0_10 = arith.constant 0 : index
    %13 = vector.load %arg5[%c0_9, %c0_10] : memref<1x1xf32, #tpu.memory_space<vmem>>, vector<1x1xf32>
    %14 = vector.broadcast %13 : vector<1x1xf32> to vector<8x1xf32>
    %15 = arith.addf %12, %14 : vector<8x1xf32>
    %c0_11 = arith.constant 0 : index
    %c0_12 = arith.constant 0 : index
    %16 = vector.load %arg6[%c0_11, %c0_12] : memref<8x1xf32, #tpu.memory_space<vmem>>, vector<8x1xf32>
    tpu.vector_store %arg6[%c0_11, %c0_12], %15 {strides = array<i32>} : memref<8x1xf32, #tpu.memory_space<vmem>>, vector<8x1xf32>,
    return
  }
  func.func @transform_0(%arg0: i32) -> (i32, i32) {
    %c0_i32 = arith.constant 0 : i32
    %c0_i32_0 = arith.constant 0 : i32
    return %arg0, %c0_i32 : i32, i32
  }
  func.func @transform_1(%arg0: i32) -> (i32, i32) {
    %c0_i32 = arith.constant 0 : i32
    %c0_i32_0 = arith.constant 0 : i32
    %c0_i32_1 = arith.constant 0 : i32
    return %c0_i32, %c0_i32_0 : i32, i32
  }
  func.func @transform_2(%arg0: i32) -> (i32, i32) {
    %c0_i32 = arith.constant 0 : i32
    %c0_i32_0 = arith.constant 0 : i32
    %c0_i32_1 = arith.constant 0 : i32
    return %c0_i32, %c0_i32_0 : i32, i32
  }
  func.func @transform_3(%arg0: i32) -> (i32, i32) {
    %c0_i32 = arith.constant 0 : i32
    %c0_i32_0 = arith.constant 0 : i32
    %c0_i32_1 = arith.constant 0 : i32
    return %c0_i32, %c0_i32_0 : i32, i32
  }
  func.func @transform_4(%arg0: i32) -> (i32, i32) {
    %c0_i32 = arith.constant 0 : i32
    %c0_i32_0 = arith.constant 0 : i32
    %c0_i32_1 = arith.constant 0 : i32
    return %c0_i32, %c0_i32_0 : i32, i32
  }
  func.func @transform_5(%arg0: i32) -> (i32, i32) {
    %c0_i32 = arith.constant 0 : i32
    %c0_i32_0 = arith.constant 0 : i32
    return %arg0, %c0_i32 : i32, i32
  }
}

</mosaic_0001>

<bundles_post_ra>
// kernel: tpu_custom_call.1
= control target key start
LH: loop header
LB: loop body
LE: loop exit
PB: predicated region body
PF: predicated region fallthrough
CT: control target
= control target key end

     0   :  { %s4654_s0 = inlined_call_operand.hbm [shape: bf16[8,896], index: 0, kind: input, shape index: {}]   ;;  %s4655_s1 = inlined_call_operand.hbm [shape: bf16[896,896], index: 1, kind: input, shape index: {}]   ;;  %s4656_s2 = inlined_call_operand.hbm [shape: f32[1,896], index: 2, kind: input, shape index: {}]   ;;  %s4657_s3 = inlined_call_operand.hbm [shape: f32[1,896], index: 3, kind: input, shape index: {}]   ;;  %s4658_s4 = inlined_call_operand.<no memory space> [shape: f32[1,1], index: 4, kind: input, shape index: {}]   ;;  %s4659_s5 = inlined_call_operand.vmem [shape: f32[8,1], index: 5, kind: output, shape index: {}]  }
   0x1   :  { %v10_v0 = vstv %s4658_s4 }
   0x2   :  { %11 = vst [vmem:[#allocation2] sm:$0x1] %v10_v0 }
   0x3   :  { %12 = vsyncpa [#allocation4], 0 }
   0x4   :  { %13 = vsyncpa [#allocation6], 0 }
   0x5   :  { %14 = vsyncpa [#allocation9], 0  ;;  %s4488_s20 = smov [#allocation5]  }
   0x6   :  { %s30_s21 = sshll.u32 %s4488_s20, 4  ;;  %s31_s21 = int_to_ptr.vmem [resolvable:$true] %s30_s21 }
   0x7   :  { %s4410_s22 = scalar_lea.vmem %s31_s21, 50176  ;;  %p4415_p1 = scmp.lt.s32.totalorder %s31_s21, %s31_s21 }
   0x8   :  { %p4411_p0 = scmp.ne.s32.totalorder %s31_s21, %s4410_s22  ;;  %p4416_p2 = scmp.lt.s32.totalorder %s4410_s22, %s4410_s22 }
   0xa   :  { %p4417_p3 = por %p4416_p2, %p4415_p1 }
   0xc   :  { %p4418_p4 = pnand %p4417_p3, %p4411_p0 }
   0xe   :  { %4421 = shalt.err (!%p4418_p4)
}
   0xf   :  { %s4489_s23 = smov 448   ;;  %s4490_s24 = smov 28  }
  0x10   :  { %36 = dma.hbm_to_vmem [thread:$0]  %s4655_s1, 50176, %s31_s21, [#allocation6], %s4489_s23, %s4489_s23, %s4490_s24  }
  0x11   :  { %s4491_s4 = smov [#allocation3]   ;;  %s4492_s28 = smov [#allocation7]  }
  0x12   :  { %s21_s27 = sshll.u32 %s4491_s4, 4  ;;  %s43_s29 = sshll.u32 %s4492_s28, 4  ;;  %s22_s27 = int_to_ptr.vmem [resolvable:$true] %s21_s27  ;;  %s44_s29 = int_to_ptr.vmem [resolvable:$true] %s43_s29 }
  0x13   :  { %s4430_s30 = scalar_lea.vmem %s22_s27, 448  ;;  %p4435_p6 = scmp.lt.s32.totalorder %s22_s27, %s22_s27 }
  0x14   :  { %p4431_p5 = scmp.ne.s32.totalorder %s22_s27, %s4430_s30  ;;  %p4436_p7 = scmp.lt.s32.totalorder %s4430_s30, %s4430_s30 }
  0x16   :  { %p4437_p8 = por %p4436_p7, %p4435_p6 }
  0x18   :  { %p4438_p9 = pnand %p4437_p8, %p4431_p5 }
  0x1a   :  { %4441 = shalt.err (!%p4438_p9)
}
  0x1b   :  { %24 = dma.hbm_to_vmem [thread:$0]  %s4654_s0, 448, %s22_s27, [#allocation4]  }
  0x1c   :  { %s4450_s8 = scalar_lea.vmem %s44_s29, 112  ;;  %s4454_s1 = scalar_lea.vmem %s44_s29, 128 }
  0x1d   :  { %p4451_p10 = scmp.ne.s32.totalorder %s44_s29, %s4450_s8  ;;  %p4455_p11 = scmp.lt.s32.totalorder %s44_s29, %s44_s29 }
  0x1e   :  { %p4456_p12 = scmp.lt.s32.totalorder %s4454_s1, %s4450_s8 }
  0x20   :  { %p4457_p13 = por %p4456_p12, %p4455_p11 }
  0x22   :  { %p4458_p0 = pnand %p4457_p13, %p4451_p10 }
  0x24   :  { %4461 = shalt.err (!%p4458_p0)
}
  0x25   :  { %46 = dma.hbm_to_vmem [thread:$0]  %s4656_s2, 112, %s44_s29, [#allocation6]  }
  0x26   :  { %s4493_s11 = smov [#allocation8]  }
  0x27   :  { %s53_s12 = sshll.u32 %s4493_s11, 4  ;;  %s54_s12 = int_to_ptr.vmem [resolvable:$true] %s53_s12 }
  0x28   :  { %s4470_s13 = scalar_lea.vmem %s54_s12, 112  ;;  %s4474_s14 = scalar_lea.vmem %s54_s12, 128 }
  0x29   :  { %p4471_p1 = scmp.ne.s32.totalorder %s54_s12, %s4470_s13  ;;  %p4475_p2 = scmp.lt.s32.totalorder %s54_s12, %s54_s12 }
  0x2a   :  { %p4476_p3 = scmp.lt.s32.totalorder %s4474_s14, %s4470_s13 }
  0x2c   :  { %p4477_p4 = por %p4476_p3, %p4475_p2 }
  0x2e   :  { %p4478_p5 = pnand %p4477_p4, %p4471_p1 }
  0x30   :  { %4481 = shalt.err (!%p4478_p5)
}
  0x31   :  { %56 = dma.hbm_to_vmem [thread:$0]  %s4657_s3, 112, %s54_s12, [#allocation9]  }
  0x32   :  { %4482 = dma.done.wait [#allocation4], 448  }
  0x33   :  { %4483 = vsyncadd [#allocation4], 4294966848 }
  0x34   :  { %4484 = dma.done.wait [#allocation6], 50288  }
  0x35   :  { %4485 = vsyncadd [#allocation6], 4294917008 }
  0x36   :  { %4486 = dma.done.wait [#allocation9], 112  }
  0x37   :  { %4487 = vsyncadd [#allocation9], 4294967184  ;;  %v3834_v1 = vld [vmem:[#allocation5 + $0x18c] ss:$28 sps:$4 sm:$0xff]   ;;  %v3840_v5 = vld [vmem:[#allocation5 + $0x154] ss:$28 sps:$4 sm:$0xff]  }
  0x38   :  { %v3836_v2 = vld [vmem:[#allocation5 + $0x50c] ss:$28 sps:$4 sm:$0xff]   ;;  %2602 = vmatprep.subr.bf16.mxu0 %v3834_v1  ;;  %v3842_v6 = vld [vmem:[#allocation5 + $0x4d4] ss:$28 sps:$4 sm:$0xff]   ;;  %v3846_v9 = vld [vmem:[#allocation5 + $0x11c] ss:$28 sps:$4 sm:$0xff]  }
  0x39   :  { %v3838_v3 = vld [vmem:[#allocation5 + $0x188] ss:$28 sps:$4 sm:$0xff]   ;;  %2643 = vmatprep.subr.bf16.mxu1 %v3836_v2  ;;  %v3844_v7 = vld [vmem:[#allocation5 + $0x150] ss:$28 sps:$4 sm:$0xff]   ;;  %v3848_v10 = vld [vmem:[#allocation5 + $0x49c] ss:$28 sps:$4 sm:$0xff]  }
  0x3a   :  { %v3839_v4 = vld [vmem:[#allocation5 + $0x508] ss:$28 sps:$4 sm:$0xff]   ;;  %2603 = vmatpush1.bf16.msra.mxu0 %v3838_v3  ;;  %v3845_v8 = vld [vmem:[#allocation5 + $0x4d0] ss:$28 sps:$4 sm:$0xff]   ;;  %v3850_v11 = vld [vmem:[#allocation5 + $0x118] ss:$28 sps:$4 sm:$0xff]  }
  0x3b   :  { %2644 = vmatpush1.bf16.msra.mxu1 %v3839_v4  ;;  %2604 = vmatprep.subr.bf16.mxu0 %v3840_v5  ;;  %v3851_v12 = vld [vmem:[#allocation5 + $0x498] ss:$28 sps:$4 sm:$0xff]   ;;  %v3852_v13 = vld [vmem:[#allocation5 + $0xe4] ss:$28 sps:$4 sm:$0xff]   ;;  %v3858_v17 = vld [vmem:[#allocation5 + $0xac] ss:$28 sps:$4 sm:$0xff]  }
  0x3c   :  { %2645 = vmatprep.subr.bf16.mxu1 %v3842_v6  ;;  %v3854_v14 = vld [vmem:[#allocation5 + $0x464] ss:$28 sps:$4 sm:$0xff]   ;;  %v3860_v18 = vld [vmem:[#allocation5 + $0x42c] ss:$28 sps:$4 sm:$0xff]   ;;  %v3864_v21 = vld [vmem:[#allocation5 + $0x74] ss:$28 sps:$4 sm:$0xff]  }
  0x3d   :  { %v3856_v15 = vld [vmem:[#allocation5 + $0xe0] ss:$28 sps:$4 sm:$0xff]   ;;  %v3862_v19 = vld [vmem:[#allocation5 + $0xa8] ss:$28 sps:$4 sm:$0xff]   ;;  %v3866_v22 = vld [vmem:[#allocation5 + $0x3f4] ss:$28 sps:$4 sm:$0xff]  }
  0x3e   :  { %2605 = vmatpush1.bf16.msra.mxu0 %v3844_v7  ;;  %v3857_v16 = vld [vmem:[#allocation5 + $0x460] ss:$28 sps:$4 sm:$0xff]   ;;  %v3863_v20 = vld [vmem:[#allocation5 + $0x428] ss:$28 sps:$4 sm:$0xff]   ;;  %v3868_v23 = vld [vmem:[#allocation5 + $0x70] ss:$28 sps:$4 sm:$0xff]  }
  0x3f   :  { %2646 = vmatpush1.bf16.msra.mxu1 %v3845_v8  ;;  %2606 = vmatprep.subr.bf16.mxu0 %v3846_v9  ;;  %v3869_v24 = vld [vmem:[#allocation5 + $0x3f0] ss:$28 sps:$4 sm:$0xff]   ;;  %v3870_v25 = vld [vmem:[#allocation5 + $0x3c] ss:$28 sps:$4 sm:$0xff]   ;;  %v3876_v29 = vld [vmem:[#allocation5 + $0x4] ss:$28 sps:$4 sm:$0xff]  }
  0x40   :  { %2647 = vmatprep.subr.bf16.mxu1 %v3848_v10  ;;  %v3872_v26 = vld [vmem:[#allocation5 + $0x3bc] ss:$28 sps:$4 sm:$0xff]   ;;  %v3878_v30 = vld [vmem:[#allocation5 + $0x384] ss:$28 sps:$4 sm:$0xff]   ;;  %v3882_v33 = vld [vmem:[#allocation5 + $0x34c] ss:$28 sps:$4 sm:$0xff]  }
  0x41   :  { %v3874_v27 = vld [vmem:[#allocation5 + $0x38] ss:$28 sps:$4 sm:$0xff]   ;;  %v3880_v31 = vld [vmem:[#allocation5] ss:$28 sps:$4 sm:$0xff]   ;;  %v3884_v34 = vld [vmem:[#allocation5 + $0x6cc] ss:$28 sps:$4 sm:$0xff]  }
  0x42   :  { %2607 = vmatpush1.bf16.msra.mxu0 %v3850_v11  ;;  %v3875_v28 = vld [vmem:[#allocation5 + $0x3b8] ss:$28 sps:$4 sm:$0xff]   ;;  %v3881_v32 = vld [vmem:[#allocation5 + $0x380] ss:$28 sps:$4 sm:$0xff]   ;;  %v3886_v35 = vld [vmem:[#allocation5 + $0x348] ss:$28 sps:$4 sm:$0xff]  }
  0x43   :  { %2648 = vmatpush1.bf16.msra.mxu1 %v3851_v12  ;;  %2608 = vmatprep.subr.bf16.mxu0 %v3852_v13  ;;  %v3887_v36 = vld [vmem:[#allocation5 + $0x6c8] ss:$28 sps:$4 sm:$0xff]   ;;  %v3888_v37 = vld [vmem:[#allocation5 + $0x314] ss:$28 sps:$4 sm:$0xff]   ;;  %v3894_v41 = vld [vmem:[#allocation5 + $0x2dc] ss:$28 sps:$4 sm:$0xff]  }
  0x44   :  { %2649 = vmatprep.subr.bf16.mxu1 %v3854_v14  ;;  %v3890_v38 = vld [vmem:[#allocation5 + $0x694] ss:$28 sps:$4 sm:$0xff]   ;;  %v3896_v42 = vld [vmem:[#allocation5 + $0x65c] ss:$28 sps:$4 sm:$0xff]   ;;  %v3900_v45 = vld [vmem:[#allocation5 + $0x2a4] ss:$28 sps:$4 sm:$0xff]  }
  0x45   :  { %v3892_v39 = vld [vmem:[#allocation5 + $0x310] ss:$28 sps:$4 sm:$0xff]   ;;  %v3898_v43 = vld [vmem:[#allocation5 + $0x2d8] ss:$28 sps:$4 sm:$0xff]   ;;  %v3902_v46 = vld [vmem:[#allocation5 + $0x624] ss:$28 sps:$4 sm:$0xff]  }
  0x46   :  { %2609 = vmatpush1.bf16.msra.mxu0 %v3856_v15  ;;  %v3893_v40 = vld [vmem:[#allocation5 + $0x690] ss:$28 sps:$4 sm:$0xff]   ;;  %v3899_v44 = vld [vmem:[#allocation5 + $0x658] ss:$28 sps:$4 sm:$0xff]   ;;  %v72_v47 = vld [vmem:[#allocation3] sm:$0xff]  ;;  %vm4496_vm0 = vmmov 0  }
  0x47   :  { %2650 = vmatpush1.bf16.msra.mxu1 %v3857_v16  ;;  %2610 = vmatprep.subr.bf16.mxu0 %v3858_v17  ;;  %v4542_v48 = vcombine.high %v72_v47, %v72_v47  ;;  %v73_v49 = vld [vmem:[#allocation3 + $0x8] sm:$0xff]  ;;  %v3904_v50 = vld [vmem:[#allocation5 + $0x2a0] ss:$28 sps:$4 sm:$0xff]   ;;  %v3910_v55 = vld [vmem:[#allocation5 + $0x268] ss:$28 sps:$4 sm:$0xff]   ;;  %v4548_v7 = vcombine.low %v72_v47, %v72_v47  ;;  %v4494_v17 = vmov 0  }
  0x48   :  { %2651 = vmatprep.subr.bf16.mxu1 %v3860_v18  ;;  %v3905_v51 = vld [vmem:[#allocation5 + $0x620] ss:$28 sps:$4 sm:$0xff]   ;;  %v4544_v52 = vcombine.high %v73_v49, %v73_v49  ;;  %v3906_v53 = vld [vmem:[#allocation5 + $0x26c] ss:$28 sps:$4 sm:$0xff]   ;;  %v3912_v57 = vld [vmem:[#allocation5 + $0x234] ss:$28 sps:$4 sm:$0xff]   ;;  %v4550_v8 = vcombine.low %v73_v49, %v73_v49 }
  0x49   :  { %v3908_v54 = vld [vmem:[#allocation5 + $0x5ec] ss:$28 sps:$4 sm:$0xff]   ;;  %2634 = vmatprep.mubr.bf16.mxu0 %v4542_v48  ;;  %v3914_v58 = vld [vmem:[#allocation5 + $0x5b4] ss:$28 sps:$4 sm:$0xff]   ;;  %v3918_v61 = vld [vmem:[#allocation5 + $0x1fc] ss:$28 sps:$4 sm:$0xff]  }
  0x4a   :  { %2611 = vmatpush1.bf16.msra.mxu0 %v3862_v19  ;;  %2675 = vmatprep.mubr.bf16.mxu1 %v4544_v52  ;;  %v3911_v56 = vld [vmem:[#allocation5 + $0x5e8] ss:$28 sps:$4 sm:$0xff]   ;;  %v3916_v59 = vld [vmem:[#allocation5 + $0x230] ss:$28 sps:$4 sm:$0xff]   ;;  %v3920_v62 = vld [vmem:[#allocation5 + $0x57c] ss:$28 sps:$4 sm:$0xff]  }
  0x4b   :  { %2652 = vmatpush1.bf16.msra.mxu1 %v3863_v20  ;;  %2612 = vmatprep.subr.bf16.mxu0 %v3864_v21  ;;  %v3917_v60 = vld [vmem:[#allocation5 + $0x5b0] ss:$28 sps:$4 sm:$0xff]   ;;  %v3922_v63 = vld [vmem:[#allocation5 + $0x1f8] ss:$28 sps:$4 sm:$0xff]   ;;  %v3924_v1 = vld [vmem:[#allocation5 + $0x1c4] ss:$28 sps:$4 sm:$0xff]  }
  0x4c   :  { %2653 = vmatprep.subr.bf16.mxu1 %v3866_v22  ;;  %v3923_v0 = vld [vmem:[#allocation5 + $0x578] ss:$28 sps:$4 sm:$0xff]   ;;  %v3926_v2 = vld [vmem:[#allocation5 + $0x544] ss:$28 sps:$4 sm:$0xff]   ;;  %v3935_v5 = vld [vmem:[#allocation5 + $0x88c] ss:$28 sps:$4 sm:$0xff]  }
  0x4d   :  { %v3928_v3 = vld [vmem:[#allocation5 + $0x1c0] ss:$28 sps:$4 sm:$0xff]   ;;  %v3938_v6 = vld [vmem:[#allocation5 + $0xc0c] ss:$28 sps:$4 sm:$0xff]   ;;  %v3942_v11 = vld [vmem:[#allocation5 + $0x854] ss:$28 sps:$4 sm:$0xff]  }
  0x4e   :  { %2613 = vmatpush1.bf16.msra.mxu0 %v3868_v23  ;;  %v3929_v4 = vld [vmem:[#allocation5 + $0x540] ss:$28 sps:$4 sm:$0xff]   ;;  %v3933_v9 = vld [vmem:[#allocation5 + $0x888] ss:$28 sps:$4 sm:$0xff]   ;;  %v3945_v12 = vld [vmem:[#allocation5 + $0xbd4] ss:$28 sps:$4 sm:$0xff]  }
  0x4f   :  { %2654 = vmatpush1.bf16.msra.mxu1 %v3869_v24  ;;  %2614 = vmatprep.subr.bf16.mxu0 %v3870_v25  ;;  %v3936_v10 = vld [vmem:[#allocation5 + $0xc08] ss:$28 sps:$4 sm:$0xff]   ;;  %v3940_v13 = vld [vmem:[#allocation5 + $0x850] ss:$28 sps:$4 sm:$0xff]   ;;  %v3948_v15 = vld [vmem:[#allocation5 + $0x81c] ss:$28 sps:$4 sm:$0xff]  }
  0x50   :  { %2655 = vmatprep.subr.bf16.mxu1 %v3872_v26  ;;  %v3943_v14 = vld [vmem:[#allocation5 + $0xbd0] ss:$28 sps:$4 sm:$0xff]   ;;  %v3951_v16 = vld [vmem:[#allocation5 + $0xb9c] ss:$28 sps:$4 sm:$0xff]   ;;  %v3954_v20 = vld [vmem:[#allocation5 + $0x7e4] ss:$28 sps:$4 sm:$0xff]  }
  0x51   :  { %v3946_v18 = vld [vmem:[#allocation5 + $0x818] ss:$28 sps:$4 sm:$0xff]   ;;  %v3957_v21 = vld [vmem:[#allocation5 + $0xb64] ss:$28 sps:$4 sm:$0xff]   ;;  %v3960_v24 = vld [vmem:[#allocation5 + $0x7ac] ss:$28 sps:$4 sm:$0xff]  }
  0x52   :  { %2615 = vmatpush1.bf16.msra.mxu0 %v3874_v27  ;;  %v3949_v19 = vld [vmem:[#allocation5 + $0xb98] ss:$28 sps:$4 sm:$0xff]   ;;  %v3952_v22 = vld [vmem:[#allocation5 + $0x7e0] ss:$28 sps:$4 sm:$0xff]   ;;  %v3963_v25 = vld [vmem:[#allocation5 + $0xb2c] ss:$28 sps:$4 sm:$0xff]  }
  0x53   :  { %2656 = vmatpush1.bf16.msra.mxu1 %v3875_v28  ;;  %2616 = vmatprep.subr.bf16.mxu0 %v3876_v29  ;;  %v3955_v23 = vld [vmem:[#allocation5 + $0xb60] ss:$28 sps:$4 sm:$0xff]   ;;  %v3958_v26 = vld [vmem:[#allocation5 + $0x7a8] ss:$28 sps:$4 sm:$0xff]   ;;  %v3966_v28 = vld [vmem:[#allocation5 + $0x774] ss:$28 sps:$4 sm:$0xff]  }
  0x54   :  { %2657 = vmatprep.subr.bf16.mxu1 %v3878_v30  ;;  %v3961_v27 = vld [vmem:[#allocation5 + $0xb28] ss:$28 sps:$4 sm:$0xff]   ;;  %v3969_v29 = vld [vmem:[#allocation5 + $0xaf4] ss:$28 sps:$4 sm:$0xff]   ;;  %v3994_v49 = vld [vmem:[#allocation5 + $0x15c] ss:$28 sps:$4 sm:$0xff]  }
  0x55   :  { %v3964_v30 = vld [vmem:[#allocation5 + $0x770] ss:$28 sps:$4 sm:$0xff]   ;;  %vm3321_vm1 = vcmask 7168  }
  0x56   :  { %2617 = vmatpush1.bf16.msra.mxu0 %v3880_v31  ;;  %v3967_v31 = vld [vmem:[#allocation5 + $0xaf0] ss:$28 sps:$4 sm:$0xff]  }
  0x57   :  { %2658 = vmatpush1.bf16.msra.mxu1 %v3881_v32  ;;  %2618 = vmatprep.subr.bf16.mxu0 %v3882_v33  ;;  %v3972_v32 = vld [vmem:[#allocation5 + $0x73c] ss:$28 sps:$4 sm:$0xff]   ;;  %v3991_v47 = vld [vmem:[#allocation5 + $0xa14] ss:$28 sps:$4 sm:$0xff]  }
  0x58   :  { %2659 = vmatprep.subr.bf16.mxu1 %v3884_v34  ;;  %v3975_v33 = vld [vmem:[#allocation5 + $0xabc] ss:$28 sps:$4 sm:$0xff]  }
  0x59   :  { %v4555_v34 = vld [vmem:[#allocation3 + $0x10] sm:$0xff] }
  0x5a   :  { %2619 = vmatpush2.bf16.msra.mxu0 %v3886_v35  ;;  %v3970_v35 = vld [vmem:[#allocation5 + $0x738] ss:$28 sps:$4 sm:$0xff]  }
  0x5b   :  { %2660 = vmatpush2.bf16.msra.mxu1 %v3887_v36  ;;  %2620 = vmatprep.subr.bf16.mxu0 %v3888_v37  ;;  %v4559_v36 = vcombine.high %v4555_v34, %v4555_v34  ;;  %v3973_v37 = vld [vmem:[#allocation5 + $0xab8] ss:$28 sps:$4 sm:$0xff]  }
  0x5c   :  { %2661 = vmatprep.subr.bf16.mxu1 %v3890_v38  ;;  %v3978_v38 = vld [vmem:[#allocation5 + $0x704] ss:$28 sps:$4 sm:$0xff]  }
  0x5e   :  { %2621 = vmatpush2.bf16.msra.mxu0 %v3892_v39  ;;  %v3981_v39 = vld [vmem:[#allocation5 + $0xa84] ss:$28 sps:$4 sm:$0xff]  }
  0x5f   :  { %2662 = vmatpush2.bf16.msra.mxu1 %v3893_v40  ;;  %2622 = vmatprep.subr.bf16.mxu0 %v3894_v41  ;;  %v3976_v40 = vld [vmem:[#allocation5 + $0x700] ss:$28 sps:$4 sm:$0xff]  }
  0x60   :  { %2663 = vmatprep.subr.bf16.mxu1 %v3896_v42  ;;  %v3979_v41 = vld [vmem:[#allocation5 + $0xa80] ss:$28 sps:$4 sm:$0xff]   ;;  %v3984_v42 = vld [vmem:[#allocation5 + $0xa4c] ss:$28 sps:$4 sm:$0xff]  }
  0x62   :  { %2623 = vmatpush2.bf16.msra.mxu0 %v3898_v43  ;;  %v3987_v43 = vld [vmem:[#allocation5 + $0x194] ss:$28 sps:$4 sm:$0xff]  }
  0x63   :  { %2664 = vmatpush2.bf16.msra.mxu1 %v3899_v44  ;;  %2624 = vmatprep.subr.bf16.mxu0 %v3900_v45  ;;  %v3982_v44 = vld [vmem:[#allocation5 + $0xa48] ss:$28 sps:$4 sm:$0xff]   ;;  %v4562_v45 = vld [vmem:[#allocation3 + $0x18] ss:$0 sps:$4 sm:$0xff]  }
  0x64   :  { %2665 = vmatprep.subr.bf16.mxu1 %v3902_v46  ;;  %v3985_v46 = vld [vmem:[#allocation5 + $0x190] ss:$28 sps:$4 sm:$0xff]  }
  0x66   :  { %2625 = vmatpush2.bf16.msra.mxu0 %v3904_v50  ;;  %v3989_v50 = vld [vmem:[#allocation5 + $0xa10] ss:$28 sps:$4 sm:$0xff]  }
  0x67   :  { %2666 = vmatpush2.bf16.msra.mxu1 %v3905_v51  ;;  %2626 = vmatprep.subr.bf16.mxu0 %v3906_v53  ;;  %v3992_v51 = vld [vmem:[#allocation5 + $0x158] ss:$28 sps:$4 sm:$0xff]  }
  0x68   :  { %2667 = vmatprep.subr.bf16.mxu1 %v3908_v54  ;;  %v3997_v53 = vld [vmem:[#allocation5 + $0x9dc] ss:$28 sps:$4 sm:$0xff]   ;;  %v4000_v54 = vld [vmem:[#allocation5 + $0x124] ss:$28 sps:$4 sm:$0xff]  }
  0x6a   :  { %2627 = vmatpush2.bf16.msra.mxu0 %v3910_v55  ;;  %v3995_v55 = vld [vmem:[#allocation5 + $0x9d8] ss:$28 sps:$4 sm:$0xff]  }
  0x6b   :  { %2668 = vmatpush2.bf16.msra.mxu1 %v3911_v56  ;;  %2628 = vmatprep.subr.bf16.mxu0 %v3912_v57  ;;  %v3998_v56 = vld [vmem:[#allocation5 + $0x120] ss:$28 sps:$4 sm:$0xff]  }
  0x6c   :  { %2669 = vmatprep.subr.bf16.mxu1 %v3914_v58  ;;  %v4003_v57 = vld [vmem:[#allocation5 + $0x9a4] ss:$28 sps:$4 sm:$0xff]   ;;  %v4006_v58 = vld [vmem:[#allocation5 + $0xec] ss:$28 sps:$4 sm:$0xff]  }
  0x6e   :  { %2629 = vmatpush2.bf16.msra.mxu0 %v3916_v59  ;;  %v4001_v59 = vld [vmem:[#allocation5 + $0x9a0] ss:$28 sps:$4 sm:$0xff]  }
  0x6f   :  { %2670 = vmatpush2.bf16.msra.mxu1 %v3917_v60  ;;  %2630 = vmatprep.subr.bf16.mxu0 %v3918_v61  ;;  %v4004_v60 = vld [vmem:[#allocation5 + $0xe8] ss:$28 sps:$4 sm:$0xff]  }
  0x70   :  { %2671 = vmatprep.subr.bf16.mxu1 %v3920_v62  ;;  %v4009_v61 = vld [vmem:[#allocation5 + $0x96c] ss:$28 sps:$4 sm:$0xff]   ;;  %v4012_v62 = vld [vmem:[#allocation5 + $0xb4] ss:$28 sps:$4 sm:$0xff]  }
  0x72   :  { %2631 = vmatpush2.bf16.msra.mxu0 %v3922_v63  ;;  %v4007_v63 = vld [vmem:[#allocation5 + $0x968] ss:$28 sps:$4 sm:$0xff]  }
  0x73   :  { %2672 = vmatpush2.bf16.msra.mxu1 %v3923_v0  ;;  %2632 = vmatprep.subr.bf16.mxu0 %v3924_v1  ;;  %v4010_v0 = vld [vmem:[#allocation5 + $0xb0] ss:$28 sps:$4 sm:$0xff]  }
  0x74   :  { %2673 = vmatprep.subr.bf16.mxu1 %v3926_v2  ;;  %v4015_v1 = vld [vmem:[#allocation5 + $0x934] ss:$28 sps:$4 sm:$0xff]   ;;  %v4018_v2 = vld [vmem:[#allocation5 + $0x7c] ss:$28 sps:$4 sm:$0xff]  }
  0x76   :  { %2633 = vmatpush2.bf16.msra.mxu0 %v3928_v3  ;;  %v4013_v3 = vld [vmem:[#allocation5 + $0x930] ss:$28 sps:$4 sm:$0xff]  }
  0x77   :  { %2674 = vmatpush2.bf16.msra.mxu1 %v3929_v4  ;;  %2684 = vmatprep.subr.bf16.mxu0 %v3935_v5  ;;  %v4016_v4 = vld [vmem:[#allocation5 + $0x78] ss:$28 sps:$4 sm:$0xff]  }
  0x78   :  { %2725 = vmatprep.subr.bf16.mxu1 %v3938_v6  ;;  %v4021_v5 = vld [vmem:[#allocation5 + $0x8fc] ss:$28 sps:$4 sm:$0xff]   ;;  %v4024_v6 = vld [vmem:[#allocation5 + $0x44] ss:$28 sps:$4 sm:$0xff]  }
  0x79   :  { %2635 = vmatmul.mubr.bf16.vlgmr.msra.gmra.mxu0 %v4548_v7 }
  0x7a   :  { %2676 = vmatmul.mubr.bf16.vlgmr.msra.gmra.mxu1 %v4550_v8  ;;  %2685 = vmatpush1.bf16.msra.mxu0 %v3933_v9  ;;  %v4019_v9 = vld [vmem:[#allocation5 + $0x8f8] ss:$28 sps:$4 sm:$0xff]  }
  0x7b   :  { %2726 = vmatpush1.bf16.msra.mxu1 %v3936_v10  ;;  %2686 = vmatprep.subr.bf16.mxu0 %v3942_v11  ;;  %v4022_v10 = vld [vmem:[#allocation5 + $0x40] ss:$28 sps:$4 sm:$0xff]  }
  0x7c   :  { %2727 = vmatprep.subr.bf16.mxu1 %v3945_v12  ;;  %2757 = vmatprep.mubr.bf16.mxu1 %v4494_v17  ;;  %v4027_v11 = vld [vmem:[#allocation5 + $0x8c4] ss:$28 sps:$4 sm:$0xff]   ;;  %v4030_v12 = vld [vmem:[#allocation5 + $0xc] ss:$28 sps:$4 sm:$0xff]  }
  0x7d   :  { %2716 = vmatprep.mubr.bf16.mxu0 %v4559_v36 }
  0x7e   :  { %2687 = vmatpush1.bf16.msra.mxu0 %v3940_v13  ;;  %v4025_v13 = vld [vmem:[#allocation5 + $0x8c0] ss:$28 sps:$4 sm:$0xff]  }
  0x7f   :  { %2728 = vmatpush1.bf16.msra.mxu1 %v3943_v14  ;;  %2688 = vmatprep.subr.bf16.mxu0 %v3948_v15  ;;  %v4028_v14 = vld [vmem:[#allocation5 + $0x8] ss:$28 sps:$4 sm:$0xff]   ;;  %v4035_v15 = vld [vmem:[#allocation5 + $0x354] ss:$28 sps:$4 sm:$0xff]  }
  0x80   :  { %2729 = vmatprep.subr.bf16.mxu1 %v3951_v16  ;;  %v4038_v16 = vld [vmem:[#allocation5 + $0x514] ss:$28 sps:$4 sm:$0xff]  }
  0x82   :  { %2689 = vmatpush1.bf16.msra.mxu0 %v3946_v18  ;;  %v4568_v18 = vcombine.low %v4555_v34, %v4555_v34  ;;  %v4062_v34 = vld [vmem:[#allocation5 + $0x434] ss:$28 sps:$4 sm:$0xff]  }
  0x83   :  { %2730 = vmatpush1.bf16.msra.mxu1 %v3949_v19  ;;  %2690 = vmatprep.subr.bf16.mxu0 %v3954_v20  ;;  %v4033_v19 = vld [vmem:[#allocation5 + $0x350] ss:$28 sps:$4 sm:$0xff]  }
  0x84   :  { %2731 = vmatprep.subr.bf16.mxu1 %v3957_v21  ;;  %v4036_v20 = vld [vmem:[#allocation5 + $0x510] ss:$28 sps:$4 sm:$0xff]   ;;  %v4041_v21 = vld [vmem:[#allocation5 + $0x31c] ss:$28 sps:$4 sm:$0xff]  }
  0x86   :  { %2691 = vmatpush1.bf16.msra.mxu0 %v3952_v22  ;;  %v4044_v22 = vld [vmem:[#allocation5 + $0x4dc] ss:$28 sps:$4 sm:$0xff]  }
  0x87   :  { %2732 = vmatpush1.bf16.msra.mxu1 %v3955_v23  ;;  %2692 = vmatprep.subr.bf16.mxu0 %v3960_v24  ;;  %v4039_v23 = vld [vmem:[#allocation5 + $0x318] ss:$28 sps:$4 sm:$0xff]  }
  0x88   :  { %2733 = vmatprep.subr.bf16.mxu1 %v3963_v25  ;;  %v4042_v24 = vld [vmem:[#allocation5 + $0x4d8] ss:$28 sps:$4 sm:$0xff]   ;;  %v4047_v25 = vld [vmem:[#allocation5 + $0x2e4] ss:$28 sps:$4 sm:$0xff]  }
  0x8a   :  { %2693 = vmatpush1.bf16.msra.mxu0 %v3958_v26  ;;  %v4050_v26 = vld [vmem:[#allocation5 + $0x4a4] ss:$28 sps:$4 sm:$0xff]  }
  0x8b   :  { %2734 = vmatpush1.bf16.msra.mxu1 %v3961_v27  ;;  %2694 = vmatprep.subr.bf16.mxu0 %v3966_v28  ;;  %v4045_v27 = vld [vmem:[#allocation5 + $0x2e0] ss:$28 sps:$4 sm:$0xff]  }
  0x8c   :  { %2735 = vmatprep.subr.bf16.mxu1 %v3969_v29  ;;  %v4048_v28 = vld [vmem:[#allocation5 + $0x4a0] ss:$28 sps:$4 sm:$0xff]   ;;  %v4053_v29 = vld [vmem:[#allocation5 + $0x2ac] ss:$28 sps:$4 sm:$0xff]  }
  0x8e   :  { %2695 = vmatpush1.bf16.msra.mxu0 %v3964_v30  ;;  %v4056_v30 = vld [vmem:[#allocation5 + $0x46c] ss:$28 sps:$4 sm:$0xff]  }
  0x8f   :  { %2736 = vmatpush1.bf16.msra.mxu1 %v3967_v31  ;;  %2696 = vmatprep.subr.bf16.mxu0 %v3972_v32  ;;  %v4051_v31 = vld [vmem:[#allocation5 + $0x2a8] ss:$28 sps:$4 sm:$0xff]  }
  0x90   :  { %2737 = vmatprep.subr.bf16.mxu1 %v3975_v33  ;;  %v4054_v32 = vld [vmem:[#allocation5 + $0x468] ss:$28 sps:$4 sm:$0xff]   ;;  %v4059_v33 = vld [vmem:[#allocation5 + $0x274] ss:$28 sps:$4 sm:$0xff]  }
  0x92   :  { %2697 = vmatpush1.bf16.msra.mxu0 %v3970_v35  ;;  %v4057_v35 = vld [vmem:[#allocation5 + $0x270] ss:$28 sps:$4 sm:$0xff]  }
  0x93   :  { %2738 = vmatpush1.bf16.msra.mxu1 %v3973_v37  ;;  %2698 = vmatprep.subr.bf16.mxu0 %v3978_v38  ;;  %v4060_v37 = vld [vmem:[#allocation5 + $0x430] ss:$28 sps:$4 sm:$0xff]   ;;  %v4065_v38 = vld [vmem:[#allocation5 + $0x23c] ss:$28 sps:$4 sm:$0xff]  }
  0x94   :  { %2739 = vmatprep.subr.bf16.mxu1 %v3981_v39  ;;  %v4068_v39 = vld [vmem:[#allocation5 + $0x3fc] ss:$28 sps:$4 sm:$0xff]  }
  0x96   :  { %2699 = vmatpush1.bf16.msra.mxu0 %v3976_v40  ;;  %v4063_v40 = vld [vmem:[#allocation5 + $0x238] ss:$28 sps:$4 sm:$0xff]  }
  0x97   :  { %2740 = vmatpush1.bf16.msra.mxu1 %v3979_v41  ;;  %2700 = vmatprep.subr.bf16.mxu0 %v3984_v42  ;;  %v4066_v41 = vld [vmem:[#allocation5 + $0x3f8] ss:$28 sps:$4 sm:$0xff]   ;;  %v4071_v42 = vld [vmem:[#allocation5 + $0x204] ss:$28 sps:$4 sm:$0xff]  }
  0x98   :  { %2766 = vmatprep.subr.bf16.mxu1 %v3987_v43  ;;  %v4074_v43 = vld [vmem:[#allocation5 + $0x3c4] ss:$28 sps:$4 sm:$0xff]  }
  0x9a   :  { %2758 = vmatmul.mubr.bf16.vlgmr.msra.gmra.mxu1 %v4562_v45  ;;  %2701 = vmatpush2.bf16.msra.mxu0 %v3982_v44  ;;  %v4069_v44 = vld [vmem:[#allocation5 + $0x200] ss:$28 sps:$4 sm:$0xff]  }
  0x9b   :  { %2767 = vmatpush1.bf16.msra.mxu1 %v3985_v46  ;;  %2702 = vmatprep.subr.bf16.mxu0 %v3991_v47  ;;  %v4072_v46 = vld [vmem:[#allocation5 + $0x3c0] ss:$28 sps:$4 sm:$0xff]   ;;  %v4077_v47 = vld [vmem:[#allocation5 + $0x1cc] ss:$28 sps:$4 sm:$0xff]  }
  0x9c   :  { %2768 = vmatprep.subr.bf16.mxu1 %v3994_v49  ;;  %2798 = vmatprep.mubr.bf16.mxu1 %v4542_v48  ;;  %v4080_v49 = vld [vmem:[#allocation5 + $0x38c] ss:$28 sps:$4 sm:$0xff]  }
  0x9e   :  { %2703 = vmatpush2.bf16.msra.mxu0 %v3989_v50  ;;  %v4075_v50 = vld [vmem:[#allocation5 + $0x1c8] ss:$28 sps:$4 sm:$0xff]  }
  0x9f   :  { %2769 = vmatpush1.bf16.msra.mxu1 %v3992_v51  ;;  %2704 = vmatprep.subr.bf16.mxu0 %v3997_v53  ;;  %v4078_v51 = vld [vmem:[#allocation5 + $0x388] ss:$28 sps:$4 sm:$0xff]   ;;  %v4083_v53 = vld [vmem:[#allocation5 + $0x6d4] ss:$28 sps:$4 sm:$0xff]  }
  0xa0   :  { %2770 = vmatprep.subr.bf16.mxu1 %v4000_v54  ;;  %v4086_v54 = vld [vmem:[#allocation5 + $0x894] ss:$28 sps:$4 sm:$0xff]  }
  0xa2   :  { %2705 = vmatpush2.bf16.msra.mxu0 %v3995_v55  ;;  %v4081_v55 = vld [vmem:[#allocation5 + $0x6d0] ss:$28 sps:$4 sm:$0xff]  }
  0xa3   :  { %2771 = vmatpush1.bf16.msra.mxu1 %v3998_v56  ;;  %2706 = vmatprep.subr.bf16.mxu0 %v4003_v57  ;;  %v4084_v56 = vld [vmem:[#allocation5 + $0x890] ss:$28 sps:$4 sm:$0xff]   ;;  %v4089_v57 = vld [vmem:[#allocation5 + $0x69c] ss:$28 sps:$4 sm:$0xff]  }
  0xa4   :  { %2772 = vmatprep.subr.bf16.mxu1 %v4006_v58  ;;  %v4092_v58 = vld [vmem:[#allocation5 + $0x85c] ss:$28 sps:$4 sm:$0xff]  }
  0xa6   :  { %2707 = vmatpush2.bf16.msra.mxu0 %v4001_v59  ;;  %v4087_v59 = vld [vmem:[#allocation5 + $0x698] ss:$28 sps:$4 sm:$0xff]  }
  0xa7   :  { %2773 = vmatpush1.bf16.msra.mxu1 %v4004_v60  ;;  %2708 = vmatprep.subr.bf16.mxu0 %v4009_v61  ;;  %v4090_v60 = vld [vmem:[#allocation5 + $0x858] ss:$28 sps:$4 sm:$0xff]   ;;  %v4095_v61 = vld [vmem:[#allocation5 + $0x664] ss:$28 sps:$4 sm:$0xff]  }
  0xa8   :  { %2774 = vmatprep.subr.bf16.mxu1 %v4012_v62  ;;  %v4098_v62 = vld [vmem:[#allocation5 + $0x824] ss:$28 sps:$4 sm:$0xff]  }
  0xaa   :  { %2709 = vmatpush2.bf16.msra.mxu0 %v4007_v63  ;;  %v4093_v63 = vld [vmem:[#allocation5 + $0x660] ss:$28 sps:$4 sm:$0xff]  }
  0xab   :  { %2775 = vmatpush1.bf16.msra.mxu1 %v4010_v0  ;;  %2710 = vmatprep.subr.bf16.mxu0 %v4015_v1  ;;  %v4096_v0 = vld [vmem:[#allocation5 + $0x820] ss:$28 sps:$4 sm:$0xff]   ;;  %v4101_v1 = vld [vmem:[#allocation5 + $0x62c] ss:$28 sps:$4 sm:$0xff]  }
  0xac   :  { %2776 = vmatprep.subr.bf16.mxu1 %v4018_v2  ;;  %v4104_v2 = vld [vmem:[#allocation5 + $0x7ec] ss:$28 sps:$4 sm:$0xff]  }
  0xae   :  { %2711 = vmatpush2.bf16.msra.mxu0 %v4013_v3  ;;  %v4099_v3 = vld [vmem:[#allocation5 + $0x628] ss:$28 sps:$4 sm:$0xff]  }
  0xaf   :  { %2777 = vmatpush1.bf16.msra.mxu1 %v4016_v4  ;;  %2712 = vmatprep.subr.bf16.mxu0 %v4021_v5  ;;  %v4102_v4 = vld [vmem:[#allocation5 + $0x7e8] ss:$28 sps:$4 sm:$0xff]   ;;  %v4107_v5 = vld [vmem:[#allocation5 + $0x5f4] ss:$28 sps:$4 sm:$0xff]  }
  0xb0   :  { %2778 = vmatprep.subr.bf16.mxu1 %v4024_v6  ;;  %v4110_v6 = vld [vmem:[#allocation5 + $0x7b4] ss:$28 sps:$4 sm:$0xff]  }
  0xb2   :  { %2713 = vmatpush2.bf16.msra.mxu0 %v4019_v9  ;;  %v4105_v9 = vld [vmem:[#allocation5 + $0x5f0] ss:$28 sps:$4 sm:$0xff]  }
  0xb3   :  { %2779 = vmatpush1.bf16.msra.mxu1 %v4022_v10  ;;  %2714 = vmatprep.subr.bf16.mxu0 %v4027_v11  ;;  %v4108_v10 = vld [vmem:[#allocation5 + $0x7b0] ss:$28 sps:$4 sm:$0xff]   ;;  %v4113_v11 = vld [vmem:[#allocation5 + $0x5bc] ss:$28 sps:$4 sm:$0xff]  }
  0xb4   :  { %2780 = vmatprep.subr.bf16.mxu1 %v4030_v12  ;;  %v4116_v12 = vld [vmem:[#allocation5 + $0x77c] ss:$28 sps:$4 sm:$0xff]  }
  0xb6   :  { %2715 = vmatpush2.bf16.msra.mxu0 %v4025_v13  ;;  %v4111_v13 = vld [vmem:[#allocation5 + $0x5b8] ss:$28 sps:$4 sm:$0xff]  }
  0xb7   :  { %2781 = vmatpush1.bf16.msra.mxu1 %v4028_v14  ;;  %2807 = vmatprep.subr.bf16.mxu0 %v4038_v16  ;;  %v4114_v14 = vld [vmem:[#allocation5 + $0x778] ss:$28 sps:$4 sm:$0xff]   ;;  %v4122_v16 = vld [vmem:[#allocation5 + $0x744] ss:$28 sps:$4 sm:$0xff]  }
  0xb8   :  { %2782 = vmatprep.subr.bf16.mxu1 %v4035_v15  ;;  %v4119_v15 = vld [vmem:[#allocation5 + $0x584] ss:$28 sps:$4 sm:$0xff]  }
  0xb9   :  { %2717 = vmatmul.mubr.bf16.vlgmr.msra.gmra.mxu0 %v4568_v18 }
  0xba   :  { %2808 = vmatpush1.bf16.msra.mxu0 %v4036_v20  ;;  %2839 = vmatprep.mubr.bf16.mxu0 %v4544_v52  ;;  %v4120_v20 = vld [vmem:[#allocation5 + $0x740] ss:$28 sps:$4 sm:$0xff]  }
  0xbb   :  { %2783 = vmatpush2.bf16.msra.mxu1 %v4033_v19  ;;  %2809 = vmatprep.subr.bf16.mxu0 %v4044_v22  ;;  %v4117_v19 = vld [vmem:[#allocation5 + $0x580] ss:$28 sps:$4 sm:$0xff]   ;;  %v4128_v22 = vld [vmem:[#allocation5 + $0x70c] ss:$28 sps:$4 sm:$0xff]  }
  0xbc   :  { %2784 = vmatprep.subr.bf16.mxu1 %v4041_v21  ;;  %v4125_v21 = vld [vmem:[#allocation5 + $0x54c] ss:$28 sps:$4 sm:$0xff]  }
  0xbe   :  { %2810 = vmatpush1.bf16.msra.mxu0 %v4042_v24  ;;  %v4126_v24 = vld [vmem:[#allocation5 + $0x708] ss:$28 sps:$4 sm:$0xff]  }
  0xbf   :  { %2785 = vmatpush2.bf16.msra.mxu1 %v4039_v23  ;;  %2811 = vmatprep.subr.bf16.mxu0 %v4050_v26  ;;  %v4123_v23 = vld [vmem:[#allocation5 + $0x548] ss:$28 sps:$4 sm:$0xff]   ;;  %v4134_v26 = vld [vmem:[#allocation5 + $0xc14] ss:$28 sps:$4 sm:$0xff]  }
  0xc0   :  { %2786 = vmatprep.subr.bf16.mxu1 %v4047_v25  ;;  %v4131_v25 = vld [vmem:[#allocation5 + $0xa54] ss:$28 sps:$4 sm:$0xff]  }
  0xc2   :  { %2812 = vmatpush1.bf16.msra.mxu0 %v4048_v28  ;;  %v4132_v28 = vld [vmem:[#allocation5 + $0xc10] ss:$28 sps:$4 sm:$0xff]  }
  0xc3   :  { %2787 = vmatpush2.bf16.msra.mxu1 %v4045_v27  ;;  %2813 = vmatprep.subr.bf16.mxu0 %v4056_v30  ;;  %v4129_v27 = vld [vmem:[#allocation5 + $0xa50] ss:$28 sps:$4 sm:$0xff]   ;;  %v4140_v30 = vld [vmem:[#allocation5 + $0xbdc] ss:$28 sps:$4 sm:$0xff]  }
  0xc4   :  { %2788 = vmatprep.subr.bf16.mxu1 %v4053_v29  ;;  %v4137_v29 = vld [vmem:[#allocation5 + $0xa1c] ss:$28 sps:$4 sm:$0xff]  }
  0xc6   :  { %2814 = vmatpush1.bf16.msra.mxu0 %v4054_v32  ;;  %v4138_v32 = vld [vmem:[#allocation5 + $0xbd8] ss:$28 sps:$4 sm:$0xff]  }
  0xc7   :  { %2789 = vmatpush2.bf16.msra.mxu1 %v4051_v31  ;;  %2815 = vmatprep.subr.bf16.mxu0 %v4062_v34  ;;  %v4135_v31 = vld [vmem:[#allocation5 + $0xa18] ss:$28 sps:$4 sm:$0xff]   ;;  %v4146_v34 = vld [vmem:[#allocation5 + $0xba4] ss:$28 sps:$4 sm:$0xff]  }
  0xc8   :  { %2790 = vmatprep.subr.bf16.mxu1 %v4059_v33  ;;  %v4143_v33 = vld [vmem:[#allocation5 + $0x9e4] ss:$28 sps:$4 sm:$0xff]  }
  0xca   :  { %2816 = vmatpush1.bf16.msra.mxu0 %v4060_v37  ;;  %v4144_v37 = vld [vmem:[#allocation5 + $0xba0] ss:$28 sps:$4 sm:$0xff]  }
  0xcb   :  { %2791 = vmatpush2.bf16.msra.mxu1 %v4057_v35  ;;  %2817 = vmatprep.subr.bf16.mxu0 %v4068_v39  ;;  %v4141_v35 = vld [vmem:[#allocation5 + $0x9e0] ss:$28 sps:$4 sm:$0xff]   ;;  %v4152_v39 = vld [vmem:[#allocation5 + $0xb6c] ss:$28 sps:$4 sm:$0xff]  }
  0xcc   :  { %2792 = vmatprep.subr.bf16.mxu1 %v4065_v38  ;;  %v4149_v38 = vld [vmem:[#allocation5 + $0x9ac] ss:$28 sps:$4 sm:$0xff]  }
  0xce   :  { %2818 = vmatpush1.bf16.msra.mxu0 %v4066_v41  ;;  %v4150_v41 = vld [vmem:[#allocation5 + $0xb68] ss:$28 sps:$4 sm:$0xff]  }
  0xcf   :  { %2793 = vmatpush2.bf16.msra.mxu1 %v4063_v40  ;;  %2819 = vmatprep.subr.bf16.mxu0 %v4074_v43  ;;  %v4147_v40 = vld [vmem:[#allocation5 + $0x9a8] ss:$28 sps:$4 sm:$0xff]   ;;  %v4158_v43 = vld [vmem:[#allocation5 + $0xb34] ss:$28 sps:$4 sm:$0xff]  }
  0xd0   :  { %2794 = vmatprep.subr.bf16.mxu1 %v4071_v42  ;;  %v4155_v42 = vld [vmem:[#allocation5 + $0x974] ss:$28 sps:$4 sm:$0xff]  }
  0xd2   :  { %2820 = vmatpush1.bf16.msra.mxu0 %v4072_v46  ;;  %v4156_v46 = vld [vmem:[#allocation5 + $0xb30] ss:$28 sps:$4 sm:$0xff]  }
  0xd3   :  { %2795 = vmatpush2.bf16.msra.mxu1 %v4069_v44  ;;  %2821 = vmatprep.subr.bf16.mxu0 %v4080_v49  ;;  %v4153_v44 = vld [vmem:[#allocation5 + $0x970] ss:$28 sps:$4 sm:$0xff]   ;;  %v4164_v49 = vld [vmem:[#allocation5 + $0xafc] ss:$28 sps:$4 sm:$0xff]  }
  0xd4   :  { %2796 = vmatprep.subr.bf16.mxu1 %v4077_v47  ;;  %v4161_v47 = vld [vmem:[#allocation5 + $0x93c] ss:$28 sps:$4 sm:$0xff]  }
  0xd6   :  { %2822 = vmatpush1.bf16.msra.mxu0 %v4078_v51  ;;  %v4162_v51 = vld [vmem:[#allocation5 + $0xaf8] ss:$28 sps:$4 sm:$0xff]  }
  0xd7   :  { %2797 = vmatpush2.bf16.msra.mxu1 %v4075_v50  ;;  %2823 = vmatprep.subr.bf16.mxu0 %v4083_v53  ;;  %v4159_v50 = vld [vmem:[#allocation5 + $0x938] ss:$28 sps:$4 sm:$0xff]   ;;  %v4167_v53 = vld [vmem:[#allocation5 + $0x904] ss:$28 sps:$4 sm:$0xff]  }
  0xd8   :  { %2848 = vmatprep.subr.bf16.mxu1 %v4086_v54  ;;  %v4170_v54 = vld [vmem:[#allocation5 + $0xac4] ss:$28 sps:$4 sm:$0xff]  }
  0xda   :  { %2799 = vmatmul.mubr.bf16.vlgmr.msra.gmra.mxu1 %v4548_v7  ;;  %2824 = vmatpush2.bf16.msra.mxu0 %v4081_v55  ;;  %v4165_v55 = vld [vmem:[#allocation5 + $0x900] ss:$28 sps:$4 sm:$0xff]  }
  0xdb   :  { %2849 = vmatpush1.bf16.msra.mxu1 %v4084_v56  ;;  %2825 = vmatprep.subr.bf16.mxu0 %v4089_v57  ;;  %v4168_v56 = vld [vmem:[#allocation5 + $0xac0] ss:$28 sps:$4 sm:$0xff]   ;;  %v4173_v57 = vld [vmem:[#allocation5 + $0x8cc] ss:$28 sps:$4 sm:$0xff]  }
  0xdc   :  { %2850 = vmatprep.subr.bf16.mxu1 %v4092_v58  ;;  %2880 = vmatprep.mubr.bf16.mxu1 %v4559_v36  ;;  %v4176_v58 = vld [vmem:[#allocation5 + $0xa8c] ss:$28 sps:$4 sm:$0xff]  }
  0xde   :  { %2826 = vmatpush2.bf16.msra.mxu0 %v4087_v59  ;;  %v4171_v59 = vld [vmem:[#allocation5 + $0x8c8] ss:$28 sps:$4 sm:$0xff]  }
  0xdf   :  { %2851 = vmatpush1.bf16.msra.mxu1 %v4090_v60  ;;  %2827 = vmatprep.subr.bf16.mxu0 %v4095_v61  ;;  %v4174_v60 = vld [vmem:[#allocation5 + $0xa88] ss:$28 sps:$4 sm:$0xff]   ;;  %v4179_v61 = vld [vmem:[#allocation5 + $0x19c] ss:$28 sps:$4 sm:$0xff]  }
  0xe0   :  { %2852 = vmatprep.subr.bf16.mxu1 %v4098_v62  ;;  %v4182_v62 = vld [vmem:[#allocation5 + $0x51c] ss:$28 sps:$4 sm:$0xff]  }
  0xe2   :  { %2828 = vmatpush2.bf16.msra.mxu0 %v4093_v63  ;;  %v4177_v63 = vld [vmem:[#allocation5 + $0x198] ss:$28 sps:$4 sm:$0xff]  }
  0xe3   :  { %2853 = vmatpush1.bf16.msra.mxu1 %v4096_v0  ;;  %2829 = vmatprep.subr.bf16.mxu0 %v4101_v1  ;;  %v4180_v0 = vld [vmem:[#allocation5 + $0x518] ss:$28 sps:$4 sm:$0xff]   ;;  %v4185_v1 = vld [vmem:[#allocation5 + $0x164] ss:$28 sps:$4 sm:$0xff]  }
  0xe4   :  { %2854 = vmatprep.subr.bf16.mxu1 %v4104_v2  ;;  %v4188_v2 = vld [vmem:[#allocation5 + $0x4e4] ss:$28 sps:$4 sm:$0xff]  }
  0xe6   :  { %2830 = vmatpush2.bf16.msra.mxu0 %v4099_v3  ;;  %v4183_v3 = vld [vmem:[#allocation5 + $0x160] ss:$28 sps:$4 sm:$0xff]  }
  0xe7   :  { %2855 = vmatpush1.bf16.msra.mxu1 %v4102_v4  ;;  %2831 = vmatprep.subr.bf16.mxu0 %v4107_v5  ;;  %v4186_v4 = vld [vmem:[#allocation5 + $0x4e0] ss:$28 sps:$4 sm:$0xff]   ;;  %v4191_v5 = vld [vmem:[#allocation5 + $0x12c] ss:$28 sps:$4 sm:$0xff]  }
  0xe8   :  { %2856 = vmatprep.subr.bf16.mxu1 %v4110_v6  ;;  %v4194_v6 = vld [vmem:[#allocation5 + $0x4ac] ss:$28 sps:$4 sm:$0xff]  }
  0xea   :  { %2832 = vmatpush2.bf16.msra.mxu0 %v4105_v9  ;;  %v4189_v9 = vld [vmem:[#allocation5 + $0x128] ss:$28 sps:$4 sm:$0xff]  }
  0xeb   :  { %2857 = vmatpush1.bf16.msra.mxu1 %v4108_v10  ;;  %2833 = vmatprep.subr.bf16.mxu0 %v4113_v11  ;;  %v526_v10 = vlaneseq  ;;  %v4192_v11 = vld [vmem:[#allocation5 + $0x4a8] ss:$28 sps:$4 sm:$0xff]  }
  0xec   :  { %2858 = vmatprep.subr.bf16.mxu1 %v4116_v12  ;;  %v4197_v12 = vld [vmem:[#allocation5 + $0xf4] ss:$28 sps:$4 sm:$0xff]  }
  0xee   :  { %2834 = vmatpush2.bf16.msra.mxu0 %v4111_v13  ;;  %v4195_v13 = vld [vmem:[#allocation5 + $0xf0] ss:$28 sps:$4 sm:$0xff]  }
  0xef   :  { %2859 = vmatpush1.bf16.msra.mxu1 %v4114_v14  ;;  %2835 = vmatprep.subr.bf16.mxu0 %v4119_v15  ;;  %v4580_v14 = vshrl.u32 %v526_v10, 7  ;;  %v4198_v15 = vld [vmem:[#allocation5 + $0x470] ss:$28 sps:$4 sm:$0xff]   ;;  %v4254_v10 = vld [vmem:[#allocation5 + $0x5fc] ss:$28 sps:$4 sm:$0xff]  }
  0xf0   :  { %2860 = vmatprep.subr.bf16.mxu1 %v4122_v16  ;;  %v4203_v16 = vld [vmem:[#allocation5 + $0xbc] ss:$28 sps:$4 sm:$0xff]  }
  0xf2   :  { %2836 = vmatpush2.bf16.msra.mxu0 %v4117_v19  ;;  %v4206_v19 = vld [vmem:[#allocation5 + $0x43c] ss:$28 sps:$4 sm:$0xff]  }
  0xf3   :  { %2861 = vmatpush1.bf16.msra.mxu1 %v4120_v20  ;;  %2837 = vmatprep.subr.bf16.mxu0 %v4125_v21  ;;  %v4201_v20 = vld [vmem:[#allocation5 + $0xb8] ss:$28 sps:$4 sm:$0xff]  }
  0xf4   :  { %2862 = vmatprep.subr.bf16.mxu1 %v4128_v22  ;;  %v4204_v21 = vld [vmem:[#allocation5 + $0x438] ss:$28 sps:$4 sm:$0xff]   ;;  %v528_v22 = vsub.s32 0, %v4580_v14 }
  0xf6   :  { %2838 = vmatpush2.bf16.msra.mxu0 %v4123_v23  ;;  %v4209_v23 = vld [vmem:[#allocation5 + $0x84] ss:$28 sps:$4 sm:$0xff]  }
  0xf7   :  { %2863 = vmatpush1.bf16.msra.mxu1 %v4126_v24  ;;  %2889 = vmatprep.subr.bf16.mxu0 %v4134_v26  ;;  %v4212_v24 = vld [vmem:[#allocation5 + $0x404] ss:$28 sps:$4 sm:$0xff]  }
  0xf8   :  { %2864 = vmatprep.subr.bf16.mxu1 %v4131_v25  ;;  %v4207_v25 = vld [vmem:[#allocation5 + $0x80] ss:$28 sps:$4 sm:$0xff]  }
  0xf9   :  { %2840 = vmatmul.mubr.bf16.vlgmr.msra.gmra.mxu0 %v4550_v8  ;;  %v4210_v26 = vld [vmem:[#allocation5 + $0x400] ss:$28 sps:$4 sm:$0xff]  }
  0xfa   :  { %2890 = vmatpush1.bf16.msra.mxu0 %v4132_v28  ;;  %2921 = vmatprep.mubr.bf16.mxu0 %v4494_v17  ;;  %v4218_v28 = vld [vmem:[#allocation5 + $0x3cc] ss:$28 sps:$4 sm:$0xff]  }
  0xfb   :  { %2865 = vmatpush2.bf16.msra.mxu1 %v4129_v27  ;;  %2891 = vmatprep.subr.bf16.mxu0 %v4140_v30  ;;  %v4215_v27 = vld [vmem:[#allocation5 + $0x4c] ss:$28 sps:$4 sm:$0xff]  }
  0xfc   :  { %2866 = vmatprep.subr.bf16.mxu1 %v4137_v29  ;;  %v4213_v29 = vld [vmem:[#allocation5 + $0x48] ss:$28 sps:$4 sm:$0xff]  }
  0xfd   :  { %v4216_v30 = vld [vmem:[#allocation5 + $0x3c8] ss:$28 sps:$4 sm:$0xff]  }
  0xfe   :  { %2892 = vmatpush1.bf16.msra.mxu0 %v4138_v32  ;;  %v4224_v32 = vld [vmem:[#allocation5 + $0x394] ss:$28 sps:$4 sm:$0xff]  }
  0xff   :  { %2867 = vmatpush2.bf16.msra.mxu1 %v4135_v31  ;;  %2893 = vmatprep.subr.bf16.mxu0 %v4146_v34  ;;  %v4221_v31 = vld [vmem:[#allocation5 + $0x14] ss:$28 sps:$4 sm:$0xff]  }
 0x100   :  { %2868 = vmatprep.subr.bf16.mxu1 %v4143_v33  ;;  %v4219_v33 = vld [vmem:[#allocation5 + $0x10] ss:$28 sps:$4 sm:$0xff]  }
 0x101   :  { %v4222_v34 = vld [vmem:[#allocation5 + $0x390] ss:$28 sps:$4 sm:$0xff]  }
 0x102   :  { %2894 = vmatpush1.bf16.msra.mxu0 %v4144_v37  ;;  %v532_v37 = vsub.s32 1, %v4580_v14 }
 0x103   :  { %2869 = vmatpush2.bf16.msra.mxu1 %v4141_v35  ;;  %2895 = vmatprep.subr.bf16.mxu0 %v4152_v39  ;;  %v4583_v35 = vld [vmem:[#allocation7] sm:$0xff]  ;;  %v4230_v39 = vld [vmem:[#allocation5 + $0x6dc] ss:$28 sps:$4 sm:$0xff]  }
 0x104   :  { %2870 = vmatprep.subr.bf16.mxu1 %v4149_v38  ;;  %v4227_v38 = vld [vmem:[#allocation5 + $0x35c] ss:$28 sps:$4 sm:$0xff]  }
 0x106   :  { %2896 = vmatpush1.bf16.msra.mxu0 %v4150_v41  ;;  %v4228_v41 = vld [vmem:[#allocation5 + $0x6d8] ss:$28 sps:$4 sm:$0xff]  }
 0x107   :  { %2871 = vmatpush2.bf16.msra.mxu1 %v4147_v40  ;;  %2897 = vmatprep.subr.bf16.mxu0 %v4158_v43  ;;  %v4225_v40 = vld [vmem:[#allocation5 + $0x358] ss:$28 sps:$4 sm:$0xff]   ;;  %v4233_v43 = vld [vmem:[#allocation5 + $0x324] ss:$28 sps:$4 sm:$0xff]  }
 0x108   :  { %2872 = vmatprep.subr.bf16.mxu1 %v4155_v42  ;;  %v529_v42 = vrot.slane %v4583_v35, %v528_v22 }
 0x10a   :  { %2898 = vmatpush1.bf16.msra.mxu0 %v4156_v46  ;;  %v533_v46 = vrot.slane %v4583_v35, %v532_v37 }
 0x10b   :  { %2873 = vmatpush2.bf16.msra.mxu1 %v4153_v44  ;;  %2899 = vmatprep.subr.bf16.mxu0 %v4164_v49  ;;  %v4236_v44 = vld [vmem:[#allocation5 + $0x6a4] ss:$28 sps:$4 sm:$0xff]  }
 0x10c   :  { %2874 = vmatprep.subr.bf16.mxu1 %v4161_v47  ;;  %v4231_v47 = vld [vmem:[#allocation5 + $0x320] ss:$28 sps:$4 sm:$0xff]  }
 0x10e   :  { %2900 = vmatpush1.bf16.msra.mxu0 %v4162_v51  ;;  %v4234_v51 = vld [vmem:[#allocation5 + $0x6a0] ss:$28 sps:$4 sm:$0xff]  }
 0x10f   :  { %2875 = vmatpush2.bf16.msra.mxu1 %v4159_v50  ;;  %2901 = vmatprep.subr.bf16.mxu0 %v4170_v54  ;;  %v4239_v54 = vld [vmem:[#allocation5 + $0x2ec] ss:$28 sps:$4 sm:$0xff]  }
 0x110   :  { %2876 = vmatprep.subr.bf16.mxu1 %v4167_v53 }
 0x112   :  { %2902 = vmatpush1.bf16.msra.mxu0 %v4168_v56 }
 0x113   :  { %2877 = vmatpush2.bf16.msra.mxu1 %v4165_v55  ;;  %2903 = vmatprep.subr.bf16.mxu0 %v4176_v58 }
 0x114   :  { %2878 = vmatprep.subr.bf16.mxu1 %v4173_v57  ;;  %v4242_v57 = vld [vmem:[#allocation5 + $0x66c] ss:$28 sps:$4 sm:$0xff]  }
 0x116   :  { %2904 = vmatpush1.bf16.msra.mxu0 %v4174_v60 }
 0x117   :  { %2879 = vmatpush2.bf16.msra.mxu1 %v4171_v59  ;;  %2930 = vmatprep.subr.bf16.mxu0 %v4179_v61  ;;  %v4237_v61 = vld [vmem:[#allocation5 + $0x2e8] ss:$28 sps:$4 sm:$0xff]  }
 0x118   :  { %2971 = vmatprep.subr.bf16.mxu1 %v4182_v62  ;;  %v4240_v62 = vld [vmem:[#allocation5 + $0x668] ss:$28 sps:$4 sm:$0xff]  }
 0x119   :  { %2922 = vmatmul.mubr.bf16.vlgmr.msra.gmra.mxu0 %v4562_v45  ;;  %v4200_v45 = vld [vmem:[#allocation5 + $0x474] ss:$28 sps:$4 sm:$0xff]  }
 0x11a   :  { %2881 = vmatmul.mubr.bf16.vlgmr.msra.gmra.mxu1 %v4568_v18  ;;  %2931 = vmatpush1.bf16.msra.mxu0 %v4177_v63 }
 0x11b   :  { %2972 = vmatpush1.bf16.msra.mxu1 %v4180_v0  ;;  %2932 = vmatprep.subr.bf16.mxu0 %v4185_v1  ;;  %v4245_v1 = vld [vmem:[#allocation5 + $0x2b4] ss:$28 sps:$4 sm:$0xff]  }
 0x11c   :  { %2973 = vmatprep.subr.bf16.mxu1 %v4188_v2  ;;  %2962 = vmatprep.mubr.bf16.mxu0 %v4542_v48 }
 0x11d   :  { %3003 = vmatprep.mubr.bf16.mxu1 %v4544_v52 }
 0x11e   :  { %2933 = vmatpush1.bf16.msra.mxu0 %v4183_v3  ;;  %v4248_v3 = vld [vmem:[#allocation5 + $0x634] ss:$28 sps:$4 sm:$0xff]  }
 0x11f   :  { %2974 = vmatpush1.bf16.msra.mxu1 %v4186_v4  ;;  %2934 = vmatprep.subr.bf16.mxu0 %v4191_v5  ;;  %v4243_v5 = vld [vmem:[#allocation5 + $0x2b0] ss:$28 sps:$4 sm:$0xff]  }
 0x120   :  { %2975 = vmatprep.subr.bf16.mxu1 %v4194_v6  ;;  %v4246_v6 = vld [vmem:[#allocation5 + $0x630] ss:$28 sps:$4 sm:$0xff]  }
 0x122   :  { %2935 = vmatpush1.bf16.msra.mxu0 %v4189_v9  ;;  %v4251_v9 = vld [vmem:[#allocation5 + $0x27c] ss:$28 sps:$4 sm:$0xff]  }
 0x123   :  { %2976 = vmatpush1.bf16.msra.mxu1 %v4192_v11  ;;  %2936 = vmatprep.subr.bf16.mxu0 %v4197_v12  ;;  %v4249_v11 = vld [vmem:[#allocation5 + $0x278] ss:$28 sps:$4 sm:$0xff]  }
 0x124   :  { %2977 = vmatprep.subr.bf16.mxu1 %v4200_v45  ;;  %v4252_v12 = vld [vmem:[#allocation5 + $0x5f8] ss:$28 sps:$4 sm:$0xff]   ;;  %v4257_v45 = vld [vmem:[#allocation5 + $0x244] ss:$28 sps:$4 sm:$0xff]  }
 0x126   :  { %2937 = vmatpush1.bf16.msra.mxu0 %v4195_v13  ;;  %v4260_v13 = vld [vmem:[#allocation5 + $0x5c4] ss:$28 sps:$4 sm:$0xff]  }
 0x127   :  { %2978 = vmatpush1.bf16.msra.mxu1 %v4198_v15  ;;  %2938 = vmatprep.subr.bf16.mxu0 %v4203_v16  ;;  %v4255_v15 = vld [vmem:[#allocation5 + $0x240] ss:$28 sps:$4 sm:$0xff]  }
 0x128   :  { %2979 = vmatprep.subr.bf16.mxu1 %v4206_v19  ;;  %v4258_v16 = vld [vmem:[#allocation5 + $0x5c0] ss:$28 sps:$4 sm:$0xff]   ;;  %v4263_v19 = vld [vmem:[#allocation5 + $0x20c] ss:$28 sps:$4 sm:$0xff]  }
 0x12a   :  { %2939 = vmatpush1.bf16.msra.mxu0 %v4201_v20  ;;  %v4266_v20 = vld [vmem:[#allocation5 + $0x58c] ss:$28 sps:$4 sm:$0xff]  }
 0x12b   :  { %2980 = vmatpush1.bf16.msra.mxu1 %v4204_v21  ;;  %2940 = vmatprep.subr.bf16.mxu0 %v4209_v23  ;;  %v4261_v21 = vld [vmem:[#allocation5 + $0x208] ss:$28 sps:$4 sm:$0xff]  }
 0x12c   :  { %2981 = vmatprep.subr.bf16.mxu1 %v4212_v24  ;;  %v4264_v23 = vld [vmem:[#allocation5 + $0x588] ss:$28 sps:$4 sm:$0xff]   ;;  %v4269_v24 = vld [vmem:[#allocation5 + $0x1d4] ss:$28 sps:$4 sm:$0xff]  }
 0x12e   :  { %2941 = vmatpush1.bf16.msra.mxu0 %v4207_v25  ;;  %v4272_v25 = vld [vmem:[#allocation5 + $0x554] ss:$28 sps:$4 sm:$0xff]  }
 0x12f   :  { %2982 = vmatpush1.bf16.msra.mxu1 %v4210_v26  ;;  %2942 = vmatprep.subr.bf16.mxu0 %v4215_v27  ;;  %v4267_v26 = vld [vmem:[#allocation5 + $0x1d0] ss:$28 sps:$4 sm:$0xff]  }
 0x130   :  { %2983 = vmatprep.subr.bf16.mxu1 %v4218_v28  ;;  %v4270_v27 = vld [vmem:[#allocation5 + $0x550] ss:$28 sps:$4 sm:$0xff]   ;;  %v4275_v28 = vld [vmem:[#allocation5 + $0x89c] ss:$28 sps:$4 sm:$0xff]  }
 0x132   :  { %2943 = vmatpush1.bf16.msra.mxu0 %v4213_v29  ;;  %v4278_v29 = vld [vmem:[#allocation5 + $0xc1c] ss:$28 sps:$4 sm:$0xff]  }
 0x133   :  { %2984 = vmatpush1.bf16.msra.mxu1 %v4216_v30  ;;  %2944 = vmatprep.subr.bf16.mxu0 %v4221_v31  ;;  %v4273_v30 = vld [vmem:[#allocation5 + $0x898] ss:$28 sps:$4 sm:$0xff]  }
 0x134   :  { %2985 = vmatprep.subr.bf16.mxu1 %v4224_v32  ;;  %v4276_v31 = vld [vmem:[#allocation5 + $0xc18] ss:$28 sps:$4 sm:$0xff]   ;;  %v4281_v32 = vld [vmem:[#allocation5 + $0x864] ss:$28 sps:$4 sm:$0xff]  }
 0x136   :  { %2945 = vmatpush1.bf16.msra.mxu0 %v4219_v33  ;;  %v4284_v33 = vld [vmem:[#allocation5 + $0xbe4] ss:$28 sps:$4 sm:$0xff]  }
 0x137   :  { %2986 = vmatpush1.bf16.msra.mxu1 %v4222_v34  ;;  %2946 = vmatprep.subr.bf16.mxu0 %v4227_v38  ;;  %v4279_v38 = vld [vmem:[#allocation5 + $0x860] ss:$28 sps:$4 sm:$0xff]  }
 0x138   :  { %2987 = vmatprep.subr.bf16.mxu1 %v4230_v39  ;;  %v4282_v39 = vld [vmem:[#allocation5 + $0xbe0] ss:$28 sps:$4 sm:$0xff]  }
 0x139   :  { %v2636_v49 = vpop.f32.mrf.mxu0 }
 0x13a   :  { %v2677_v50 = vpop.f32.mrf.mxu1  ;;  %v2637_v53 = vadd.f32 %v2636_v49, %v529_v42  ;;  %2947 = vmatpush2.bf16.msra.mxu0 %v4225_v40  ;;  %v4287_v40 = vld [vmem:[#allocation5 + $0x82c] ss:$28 sps:$4 sm:$0xff]   ;;  %v4296_v49 = vld [vmem:[#allocation5 + $0xb74] ss:$28 sps:$4 sm:$0xff]  }
 0x13b   :  { %2988 = vmatpush2.bf16.msra.mxu1 %v4228_v41  ;;  %v2638_v55 = vpop.f32.mrf.mxu0  ;;  %2948 = vmatprep.subr.bf16.mxu0 %v4233_v43  ;;  %v4290_v41 = vld [vmem:[#allocation5 + $0xbac] ss:$28 sps:$4 sm:$0xff]  }
 0x13c   :  { %v2679_v56 = vpop.f32.mrf.mxu1  ;;  %2989 = vmatprep.subr.bf16.mxu1 %v4236_v44  ;;  %v2639_v58 = vadd.f32 %v2638_v55, %v533_v46  ;;  %v4592_v59 = vadd.f32 %v2677_v50, %v2637_v53  ;;  %v4285_v44 = vld [vmem:[#allocation5 + $0x828] ss:$28 sps:$4 sm:$0xff]   ;;  %v4294_v53 = vld [vmem:[#allocation5 + $0xb70] ss:$28 sps:$4 sm:$0xff]   ;;  %v4297_v55 = vld [vmem:[#allocation5 + $0x7b8] ss:$28 sps:$4 sm:$0xff]  }
 0x13d   :  { %v2640_v60 = vpop.f32.mrf.mxu0  ;;  %v4288_v46 = vld [vmem:[#allocation5 + $0xba8] ss:$28 sps:$4 sm:$0xff]  }
 0x13e   :  { %v2681_v63 = vpop.f32.mrf.mxu1  ;;  %v4594_v0 = vadd.f32 %v2679_v56, %v2639_v58  ;;  %2949 = vmatpush2.bf16.msra.mxu0 %v4231_v47  ;;  %v4293_v47 = vld [vmem:[#allocation5 + $0x7f4] ss:$28 sps:$4 sm:$0xff]   ;;  %v4308_v58 = vld [vmem:[#allocation5 + $0xb04] ss:$28 sps:$4 sm:$0xff]  }
 0x13f   :  { %2990 = vmatpush2.bf16.msra.mxu1 %v4234_v51  ;;  %v2641_v2 = vpop.f32.mrf.mxu0  ;;  %2950 = vmatprep.subr.bf16.mxu0 %v4239_v54  ;;  %v4291_v51 = vld [vmem:[#allocation5 + $0x7f0] ss:$28 sps:$4 sm:$0xff]   ;;  %v4299_v54 = vld [vmem:[#allocation5 + $0x7bc] ss:$28 sps:$4 sm:$0xff]  }
 0x140   :  { %2991 = vmatprep.subr.bf16.mxu1 %v4242_v57  ;;  %v2682_v4 = vpop.f32.mrf.mxu1  ;;  %v4300_v56 = vld [vmem:[#allocation5 + $0xb38] ss:$28 sps:$4 sm:$0xff]   ;;  %v4305_v57 = vld [vmem:[#allocation5 + $0x784] ss:$28 sps:$4 sm:$0xff]   ;;  %v4314_v63 = vld [vmem:[#allocation5 + $0xacc] ss:$28 sps:$4 sm:$0xff]  }
 0x141   :  { %v4303_v60 = vld [vmem:[#allocation5 + $0x780] ss:$28 sps:$4 sm:$0xff]   ;;  %v4312_v2 = vld [vmem:[#allocation5 + $0xac8] ss:$28 sps:$4 sm:$0xff]   ;;  %v4320_v4 = vld [vmem:[#allocation5 + $0xa94] ss:$28 sps:$4 sm:$0xff]  }
 0x142   :  { %2951 = vmatpush2.bf16.msra.mxu0 %v4237_v61  ;;  %v4306_v61 = vld [vmem:[#allocation5 + $0xb00] ss:$28 sps:$4 sm:$0xff]  }
 0x143   :  { %2992 = vmatpush2.bf16.msra.mxu1 %v4240_v62  ;;  %2952 = vmatprep.subr.bf16.mxu0 %v4245_v1  ;;  %v4311_v62 = vld [vmem:[#allocation5 + $0x74c] ss:$28 sps:$4 sm:$0xff]  }
 0x144   :  { %2993 = vmatprep.subr.bf16.mxu1 %v4248_v3  ;;  %v4309_v1 = vld [vmem:[#allocation5 + $0x748] ss:$28 sps:$4 sm:$0xff]   ;;  %v4317_v3 = vld [vmem:[#allocation5 + $0x714] ss:$28 sps:$4 sm:$0xff]  }
 0x146   :  { %2953 = vmatpush2.bf16.msra.mxu0 %v4243_v5  ;;  %v4315_v5 = vld [vmem:[#allocation5 + $0x710] ss:$28 sps:$4 sm:$0xff]  }
 0x147   :  { %2994 = vmatpush2.bf16.msra.mxu1 %v4246_v6  ;;  %2954 = vmatprep.subr.bf16.mxu0 %v4251_v9  ;;  %v4318_v6 = vld [vmem:[#allocation5 + $0xa90] ss:$28 sps:$4 sm:$0xff]   ;;  %v4323_v9 = vld [vmem:[#allocation5 + $0xa5c] ss:$28 sps:$4 sm:$0xff]  }
 0x148   :  { %2995 = vmatprep.subr.bf16.mxu1 %v4254_v10  ;;  %v4324_v10 = vld [vmem:[#allocation5 + $0x360] ss:$28 sps:$4 sm:$0xff]  }
 0x14a   :  { %2955 = vmatpush2.bf16.msra.mxu0 %v4249_v11  ;;  %v4321_v11 = vld [vmem:[#allocation5 + $0xa58] ss:$28 sps:$4 sm:$0xff]  }
 0x14b   :  { %2996 = vmatpush2.bf16.msra.mxu1 %v4252_v12  ;;  %2956 = vmatprep.subr.bf16.mxu0 %v4257_v45  ;;  %v4325_v12 = vld [vmem:[#allocation5 + $0x1a0] ss:$28 sps:$4 sm:$0xff]  }
 0x14c   :  { %2997 = vmatprep.subr.bf16.mxu1 %v4260_v13  ;;  %v4328_v45 = vld [vmem:[#allocation5 + $0xa24] ss:$28 sps:$4 sm:$0xff]  }
 0x14d   :  { %v4329_v13 = vld [vmem:[#allocation5 + $0x328] ss:$28 sps:$4 sm:$0xff]  }
 0x14e   :  { %2957 = vmatpush2.bf16.msra.mxu0 %v4255_v15 }
 0x14f   :  { %2998 = vmatpush2.bf16.msra.mxu1 %v4258_v16  ;;  %2958 = vmatprep.subr.bf16.mxu0 %v4263_v19  ;;  %v4604_v16 = vld [vmem:[#allocation3 + $0x18] ss:$0 sps:$4 sm:$0xff]  }
 0x150   :  { %2999 = vmatprep.subr.bf16.mxu1 %v4266_v20  ;;  %v4326_v20 = vld [vmem:[#allocation5 + $0xa20] ss:$28 sps:$4 sm:$0xff]  }
 0x152   :  { %2959 = vmatpush2.bf16.msra.mxu0 %v4261_v21  ;;  %v4330_v21 = vld [vmem:[#allocation5 + $0x168] ss:$28 sps:$4 sm:$0xff]  }
 0x153   :  { %3000 = vmatpush2.bf16.msra.mxu1 %v4264_v23  ;;  %2960 = vmatprep.subr.bf16.mxu0 %v4269_v24  ;;  %v4608_v23 = vld [vmem:[#allocation8] sm:$0xff] }
 0x154   :  { %3001 = vmatprep.subr.bf16.mxu1 %v4272_v25  ;;  %v4333_v25 = vld [vmem:[#allocation5 + $0x9ec] ss:$28 sps:$4 sm:$0xff]  }
 0x156   :  { %2961 = vmatpush2.bf16.msra.mxu0 %v4267_v26  ;;  %v4334_v26 = vld [vmem:[#allocation5 + $0x2f0] ss:$28 sps:$4 sm:$0xff]  }
 0x157   :  { %3002 = vmatpush2.bf16.msra.mxu1 %v4270_v27  ;;  %3012 = vmatprep.subr.bf16.mxu0 %v4275_v28 }
 0x158   :  { %3053 = vmatprep.subr.bf16.mxu1 %v4278_v29 }
 0x159   :  { %2963 = vmatmul.mubr.bf16.vlgmr.msra.gmra.mxu0 %v4548_v7 }
 0x15a   :  { %3004 = vmatmul.mubr.bf16.vlgmr.msra.gmra.mxu1 %v4550_v8  ;;  %v4598_v34 = vpop.f32.mrf.mxu1  ;;  %3013 = vmatpush1.bf16.msra.mxu0 %v4273_v30  ;;  %v3270_v30 = vrot.slane %v4608_v23, %v532_v37  ;;  %v4343_v37 = vld [vmem:[#allocation5 + $0x97c] ss:$28 sps:$4 sm:$0xff]  }
 0x15b   :  { %3054 = vmatpush1.bf16.msra.mxu1 %v4276_v31  ;;  %3014 = vmatprep.subr.bf16.mxu0 %v4281_v32 }
 0x15c   :  { %3055 = vmatprep.subr.bf16.mxu1 %v4284_v33  ;;  %v4600_v42 = vpop.f32.mrf.mxu1  ;;  %3085 = vmatprep.mubr.bf16.mxu1 %v4494_v17  ;;  %v4302_v17 = vld [vmem:[#allocation5 + $0xb3c] ss:$28 sps:$4 sm:$0xff]   ;;  %v4331_v33 = vld [vmem:[#allocation5 + $0x9e8] ss:$28 sps:$4 sm:$0xff]  }
 0x15d   :  { %3044 = vmatprep.mubr.bf16.mxu0 %v4559_v36 }
 0x15e   :  { %v2763_v43 = vpop.f32.mrf.mxu1  ;;  %3015 = vmatpush1.bf16.msra.mxu0 %v4279_v38 }
 0x15f   :  { %3056 = vmatpush1.bf16.msra.mxu1 %v4282_v39  ;;  %3016 = vmatprep.subr.bf16.mxu0 %v4287_v40  ;;  %v4340_v43 = vld [vmem:[#allocation5 + $0xf8] ss:$28 sps:$4 sm:$0xff]  }
 0x160   :  { %3057 = vmatprep.subr.bf16.mxu1 %v4290_v41  ;;  %v2764_v50 = vpop.f32.mrf.mxu1 }
 0x161   :  { %v4349_v50 = vld [vmem:[#allocation5 + $0x248] ss:$28 sps:$4 sm:$0xff]  }
 0x162   :  { %3017 = vmatpush1.bf16.msra.mxu0 %v4285_v44 }
 0x163   :  { %3058 = vmatpush1.bf16.msra.mxu1 %v4288_v46  ;;  %3018 = vmatprep.subr.bf16.mxu0 %v4293_v47  ;;  %v4341_v46 = vld [vmem:[#allocation5 + $0x978] ss:$28 sps:$4 sm:$0xff]   ;;  %v4345_v47 = vld [vmem:[#allocation5 + $0xc0] ss:$28 sps:$4 sm:$0xff]  }
 0x164   :  { %3059 = vmatprep.subr.bf16.mxu1 %v4296_v49  ;;  %v4348_v49 = vld [vmem:[#allocation5 + $0x944] ss:$28 sps:$4 sm:$0xff]  }
 0x166   :  { %3019 = vmatpush1.bf16.msra.mxu0 %v4291_v51  ;;  %v4346_v51 = vld [vmem:[#allocation5 + $0x940] ss:$28 sps:$4 sm:$0xff]  }
 0x167   :  { %3060 = vmatpush1.bf16.msra.mxu1 %v4294_v53  ;;  %3020 = vmatprep.subr.bf16.mxu0 %v4299_v54  ;;  %v4350_v53 = vld [vmem:[#allocation5 + $0x88] ss:$28 sps:$4 sm:$0xff]  }
 0x168   :  { %3061 = vmatprep.subr.bf16.mxu1 %v4302_v17  ;;  %v4353_v54 = vld [vmem:[#allocation5 + $0x90c] ss:$28 sps:$4 sm:$0xff]  }
 0x169   :  { %v4354_v17 = vld [vmem:[#allocation5 + $0x210] ss:$28 sps:$4 sm:$0xff]  }
 0x16a   :  { %3021 = vmatpush1.bf16.msra.mxu0 %v4297_v55  ;;  %v4351_v55 = vld [vmem:[#allocation5 + $0x908] ss:$28 sps:$4 sm:$0xff]  }
 0x16b   :  { %3062 = vmatpush1.bf16.msra.mxu1 %v4300_v56  ;;  %3022 = vmatprep.subr.bf16.mxu0 %v4305_v57  ;;  %v4355_v56 = vld [vmem:[#allocation5 + $0x50] ss:$28 sps:$4 sm:$0xff]  }
 0x16c   :  { %3063 = vmatprep.subr.bf16.mxu1 %v4308_v58  ;;  %v4358_v57 = vld [vmem:[#allocation5 + $0x8d4] ss:$28 sps:$4 sm:$0xff]  }
 0x16d   :  { %v4359_v58 = vld [vmem:[#allocation5 + $0x1d8] ss:$28 sps:$4 sm:$0xff]  }
 0x16e   :  { %3023 = vmatpush1.bf16.msra.mxu0 %v4303_v60  ;;  %v4356_v60 = vld [vmem:[#allocation5 + $0x8d0] ss:$28 sps:$4 sm:$0xff]  }
 0x16f   :  { %3064 = vmatpush1.bf16.msra.mxu1 %v4306_v61  ;;  %3024 = vmatprep.subr.bf16.mxu0 %v4311_v62  ;;  %v4360_v61 = vld [vmem:[#allocation5 + $0x18] ss:$28 sps:$4 sm:$0xff]   ;;  %v4361_v62 = vld [vmem:[#allocation5 + $0x6e0] ss:$28 sps:$4 sm:$0xff]  }
 0x170   :  { %3065 = vmatprep.subr.bf16.mxu1 %v4314_v63  ;;  %v4363_v63 = vld [vmem:[#allocation5 + $0xa60] ss:$28 sps:$4 sm:$0xff]  }
 0x172   :  { %3025 = vmatpush1.bf16.msra.mxu0 %v4309_v1  ;;  %v4362_v1 = vld [vmem:[#allocation5 + $0x520] ss:$28 sps:$4 sm:$0xff]  }
 0x173   :  { %3066 = vmatpush1.bf16.msra.mxu1 %v4312_v2  ;;  %3026 = vmatprep.subr.bf16.mxu0 %v4317_v3  ;;  %v4364_v2 = vld [vmem:[#allocation5 + $0x8a0] ss:$28 sps:$4 sm:$0xff]   ;;  %v4365_v3 = vld [vmem:[#allocation5 + $0x6a8] ss:$28 sps:$4 sm:$0xff]  }
 0x174   :  { %3067 = vmatprep.subr.bf16.mxu1 %v4320_v4  ;;  %v4367_v4 = vld [vmem:[#allocation5 + $0xa28] ss:$28 sps:$4 sm:$0xff]  }
 0x176   :  { %3027 = vmatpush1.bf16.msra.mxu0 %v4315_v5 }
 0x177   :  { %3068 = vmatpush1.bf16.msra.mxu1 %v4318_v6  ;;  %3028 = vmatprep.subr.bf16.mxu0 %v4323_v9  ;;  %v4366_v6 = vld [vmem:[#allocation5 + $0x4e8] ss:$28 sps:$4 sm:$0xff]  }
 0x178   :  { %3730 = vmatprep.subr.bf16.mxu1 %v4324_v10  ;;  %v4368_v9 = vld [vmem:[#allocation5 + $0x868] ss:$28 sps:$4 sm:$0xff]   ;;  %v4369_v10 = vld [vmem:[#allocation5 + $0x670] ss:$28 sps:$4 sm:$0xff]  }
 0x179   :  { %v2718_v15 = vpop.f32.mrf.mxu0 }
 0x17a   :  { %3086 = vmatmul.mubr.bf16.vlgmr.msra.gmra.mxu1 %v4604_v16  ;;  %v2719_v19 = vadd.f32 %v2718_v15, %v4592_v59  ;;  %3029 = vmatpush2.bf16.msra.mxu0 %v4321_v11  ;;  %v3266_v59 = vrot.slane %v4608_v23, %v528_v22  ;;  %v4336_v22 = vld [vmem:[#allocation5 + $0x9b0] ss:$28 sps:$4 sm:$0xff]   ;;  %v4373_v15 = vld [vmem:[#allocation5 + $0x638] ss:$28 sps:$4 sm:$0xff]  }
 0x17b   :  { %3731 = vmatpush3.bf16.msra.mxu1 %v4325_v12  ;;  %v2720_v24 = vpop.f32.mrf.mxu0  ;;  %3030 = vmatprep.subr.bf16.mxu0 %v4328_v45  ;;  %v4371_v11 = vld [vmem:[#allocation5 + $0x9f0] ss:$28 sps:$4 sm:$0xff]  }
 0x17c   :  { %3732 = vmatprep.subr.bf16.mxu1 %v4329_v13  ;;  %v2760_v27 = vadd.f32 %v4598_v34, %v2719_v19  ;;  %v2721_v28 = vadd.f32 %v2720_v24, %v4594_v0  ;;  %3126 = vmatprep.mubr.bf16.mxu1 %v4542_v48  ;;  %v4335_v34 = vld [vmem:[#allocation5 + $0x130] ss:$28 sps:$4 sm:$0xff]   ;;  %v4339_v0 = vld [vmem:[#allocation5 + $0x2b8] ss:$28 sps:$4 sm:$0xff]  }
 0x17d   :  { %v2722_v29 = vpop.f32.mrf.mxu0  ;;  %v4338_v48 = vld [vmem:[#allocation5 + $0x9b4] ss:$28 sps:$4 sm:$0xff]  }
 0x17e   :  { %v3254_v31 = vmax.f32 %v2760_v27, 0.0  ;;  %v2762_v32 = vadd.f32 %v4600_v42, %v2721_v28  ;;  %3031 = vmatpush2.bf16.msra.mxu0 %v4326_v20  ;;  %v4344_v42 = vld [vmem:[#allocation5 + $0x280] ss:$28 sps:$4 sm:$0xff]   ;;  %v4372_v13 = vld [vmem:[#allocation5 + $0x830] ss:$28 sps:$4 sm:$0xff]  }
 0x17f   :  { %3733 = vmatpush3.bf16.msra.mxu1 %v4330_v21  ;;  %v2723_v38 = vpop.f32.mrf.mxu0  ;;  %3032 = vmatprep.subr.bf16.mxu0 %v4333_v25  ;;  %v4375_v19 = vld [vmem:[#allocation5 + $0x9b8] ss:$28 sps:$4 sm:$0xff]   ;;  %v4377_v25 = vld [vmem:[#allocation5 + $0x600] ss:$28 sps:$4 sm:$0xff]   ;;  %v4381_v27 = vld [vmem:[#allocation5 + $0x5c8] ss:$28 sps:$4 sm:$0xff]  }
 0x180   :  { %3734 = vmatprep.subr.bf16.mxu1 %v4334_v26  ;;  %v3255_v39 = vmax.f32 %v2762_v32, 0.0  ;;  %v3298_v40 = vmul.f32 %v3266_v59, %v3254_v31  ;;  %v4374_v21 = vld [vmem:[#allocation5 + $0x478] ss:$28 sps:$4 sm:$0xff]   ;;  %v4380_v26 = vld [vmem:[#allocation5 + $0x7c0] ss:$28 sps:$4 sm:$0xff]  }
 0x181   :  { %v4376_v24 = vld [vmem:[#allocation5 + $0x7f8] ss:$28 sps:$4 sm:$0xff]   ;;  %v4383_v28 = vld [vmem:[#allocation5 + $0x948] ss:$28 sps:$4 sm:$0xff]   ;;  %v4387_v31 = vld [vmem:[#allocation5 + $0x910] ss:$28 sps:$4 sm:$0xff]  }
 0x182   :  { %v3299_v41 = vmul.f32 %v3270_v30, %v3255_v39  ;;  %3033 = vmatpush2.bf16.msra.mxu0 %v4331_v33  ;;  %v4382_v29 = vld [vmem:[#allocation5 + $0x408] ss:$28 sps:$4 sm:$0xff]   ;;  %v4385_v30 = vld [vmem:[#allocation5 + $0x590] ss:$28 sps:$4 sm:$0xff]   ;;  %v4391_v38 = vld [vmem:[#allocation5 + $0x8d8] ss:$28 sps:$4 sm:$0xff]  }
 0x183   :  { %3735 = vmatpush3.bf16.msra.mxu1 %v4335_v34  ;;  %3034 = vmatprep.subr.bf16.mxu0 %v4338_v48  ;;  %v4384_v59 = vld [vmem:[#allocation5 + $0x788] ss:$28 sps:$4 sm:$0xff]   ;;  %v4386_v32 = vld [vmem:[#allocation5 + $0x3d0] ss:$28 sps:$4 sm:$0xff]   ;;  %v4389_v34 = vld [vmem:[#allocation5 + $0x558] ss:$28 sps:$4 sm:$0xff]  }
 0x184   :  { %3736 = vmatprep.subr.bf16.mxu1 %v4339_v0  ;;  %v4620_v44 = vadd.f32 %v3299_v41, %v3298_v40  ;;  %v4388_v33 = vld [vmem:[#allocation5 + $0x750] ss:$28 sps:$4 sm:$0xff]   ;;  %v536_v48 = vsub.s32 2, %v4580_v14  ;;  %v540_v0 = vsub.s32 3, %v4580_v14  ;;  %v4390_v39 = vld [vmem:[#allocation5 + $0x398] ss:$28 sps:$4 sm:$0xff]  }
 0x185   :  { %v4392_v40 = vld [vmem:[#allocation5 + $0x718] ss:$28 sps:$4 sm:$0xff]  }
 0x186   :  { %3035 = vmatpush2.bf16.msra.mxu0 %v4336_v22  ;;  %v537_v41 = vrot.slane %v4583_v35, %v536_v48  ;;  %v541_v22 = vrot.slane %v4583_v35, %v540_v0 }
 0x187   :  { %3737 = vmatpush3.bf16.msra.mxu1 %v4340_v43  ;;  %3036 = vmatprep.subr.bf16.mxu0 %v4343_v37  ;;  %v4393_v43 = vld [vmem:[#allocation5 + $0xc20] ss:$28 sps:$4 sm:$0xff]   ;;  %v4495_v37 = vmov 0.0  }
 0x188   :  { %3738 = vmatprep.subr.bf16.mxu1 %v4344_v42 }
 0x18a   :  { %3037 = vmatpush2.bf16.msra.mxu0 %v4341_v46 }
 0x18b   :  { %3739 = vmatpush3.bf16.msra.mxu1 %v4345_v47  ;;  %3038 = vmatprep.subr.bf16.mxu0 %v4348_v49 }
 0x18c   :  { %3740 = vmatprep.subr.bf16.mxu1 %v4349_v50  ;;  %v4394_v50 = vld [vmem:[#allocation5 + $0xbe8] ss:$28 sps:$4 sm:$0xff]  }
 0x18e   :  { %3039 = vmatpush2.bf16.msra.mxu0 %v4346_v51 }
 0x18f   :  { %3741 = vmatpush3.bf16.msra.mxu1 %v4350_v53  ;;  %3040 = vmatprep.subr.bf16.mxu0 %v4353_v54 }
 0x190   :  { %3742 = vmatprep.subr.bf16.mxu1 %v4354_v17  ;;  %v4395_v17 = vld [vmem:[#allocation5 + $0xbb0] ss:$28 sps:$4 sm:$0xff]  }
 0x192   :  { %3041 = vmatpush2.bf16.msra.mxu0 %v4351_v55 }
 0x193   :  { %3743 = vmatpush3.bf16.msra.mxu1 %v4355_v56  ;;  %3042 = vmatprep.subr.bf16.mxu0 %v4358_v57  ;;  %v4396_v56 = vld [vmem:[#allocation5 + $0xb78] ss:$28 sps:$4 sm:$0xff]   ;;  %v4399_v57 = vld [vmem:[#allocation5 + $0xad0] ss:$28 sps:$4 sm:$0xff]  }
 0x194   :  { %3744 = vmatprep.subr.bf16.mxu1 %v4359_v58  ;;  %v4400_v58 = vld [vmem:[#allocation5 + $0xa98] ss:$28 sps:$4 sm:$0xff]  }
 0x196   :  { %3043 = vmatpush2.bf16.msra.mxu0 %v4356_v60 }
 0x197   :  { %3745 = vmatpush3.bf16.msra.mxu1 %v4360_v61  ;;  %3752 = vmatprep.subr.bf16.mxu0 %v4361_v62 }
 0x198   :  { %3774 = vmatprep.subr.bf16.mxu1 %v4363_v63 }
 0x199   :  { %3045 = vmatmul.mubr.bf16.vlgmr.msra.gmra.mxu0 %v4568_v18 }
 0x19a   :  { %3127 = vmatmul.mubr.bf16.vlgmr.msra.gmra.mxu1 %v4548_v7  ;;  %v4624_v5 = vpop.f32.mrf.mxu1  ;;  %3753 = vmatpush3.bf16.msra.mxu0 %v4362_v1  ;;  %v4370_v7 = vld [vmem:[#allocation5 + $0x4b0] ss:$28 sps:$4 sm:$0xff]  }
 0x19b   :  { %3775 = vmatpush3.bf16.msra.mxu1 %v4364_v2  ;;  %3754 = vmatprep.subr.bf16.mxu0 %v4365_v3  ;;  %v2801_v42 = vadd.f32 %v4624_v5, %v537_v41  ;;  %v3274_v3 = vrot.slane %v4608_v23, %v536_v48 }
 0x19c   :  { %3776 = vmatprep.subr.bf16.mxu1 %v4367_v4  ;;  %v4626_v12 = vpop.f32.mrf.mxu1  ;;  %3166 = vmatprep.mubr.bf16.mxu0 %v4544_v52  ;;  %v4379_v52 = vld [vmem:[#allocation5 + $0x980] ss:$28 sps:$4 sm:$0xff]  }
 0x19d   :  { %3206 = vmatprep.mubr.bf16.mxu1 %v4559_v36  ;;  %v4378_v36 = vld [vmem:[#allocation5 + $0x440] ss:$28 sps:$4 sm:$0xff]   ;;  %v2803_v47 = vadd.f32 %v4626_v12, %v541_v22 }
 0x19e   :  { %v2804_v45 = vpop.f32.mrf.mxu1  ;;  %3755 = vmatpush3.bf16.msra.mxu0 %v4366_v6 }
 0x19f   :  { %3777 = vmatpush3.bf16.msra.mxu1 %v4368_v9  ;;  %3756 = vmatprep.subr.bf16.mxu0 %v4369_v10 }
 0x1a0   :  { %3778 = vmatprep.subr.bf16.mxu1 %v4371_v11  ;;  %v2805_v20 = vpop.f32.mrf.mxu1  ;;  %v3278_v11 = vrot.slane %v4608_v23, %v540_v0 }
 0x1a1   :  { %v544_v20 = vsub.s32 4, %v4580_v14 }
 0x1a2   :  { %3757 = vmatpush3.bf16.msra.mxu0 %v4370_v7 }
 0x1a3   :  { %3779 = vmatpush3.bf16.msra.mxu1 %v4372_v13  ;;  %3758 = vmatprep.subr.bf16.mxu0 %v4373_v15 }
 0x1a4   :  { %3780 = vmatprep.subr.bf16.mxu1 %v4375_v19 }
 0x1a6   :  { %3759 = vmatpush3.bf16.msra.mxu0 %v4374_v21  ;;  %v548_v21 = vsub.s32 5, %v4580_v14 }
 0x1a7   :  { %3781 = vmatpush3.bf16.msra.mxu1 %v4376_v24  ;;  %3760 = vmatprep.subr.bf16.mxu0 %v4377_v25  ;;  %v545_v24 = vrot.slane %v4583_v35, %v544_v20 }
 0x1a8   :  { %3782 = vmatprep.subr.bf16.mxu1 %v4379_v52  ;;  %v549_v25 = vrot.slane %v4583_v35, %v548_v21 }
 0x1aa   :  { %3761 = vmatpush3.bf16.msra.mxu0 %v4378_v36 }
 0x1ab   :  { %3783 = vmatpush3.bf16.msra.mxu1 %v4380_v26  ;;  %3762 = vmatprep.subr.bf16.mxu0 %v4381_v27 }
 0x1ac   :  { %3784 = vmatprep.subr.bf16.mxu1 %v4383_v28 }
 0x1ae   :  { %3763 = vmatpush3.bf16.msra.mxu0 %v4382_v29 }
 0x1af   :  { %3785 = vmatpush3.bf16.msra.mxu1 %v4384_v59  ;;  %3764 = vmatprep.subr.bf16.mxu0 %v4385_v30 }
 0x1b0   :  { %3786 = vmatprep.subr.bf16.mxu1 %v4387_v31 }
 0x1b2   :  { %3765 = vmatpush3.bf16.msra.mxu0 %v4386_v32 }
 0x1b3   :  { %3787 = vmatpush3.bf16.msra.mxu1 %v4388_v33  ;;  %3766 = vmatprep.subr.bf16.mxu0 %v4389_v34 }
 0x1b4   :  { %3788 = vmatprep.subr.bf16.mxu1 %v4391_v38 }
 0x1b6   :  { %3767 = vmatpush3.bf16.msra.mxu0 %v4390_v39 }
 0x1b7   :  { %3789 = vmatpush3.bf16.msra.mxu1 %v4392_v40  ;;  %3805 = vmatprep.subr.bf16.mxu0 %v4495_v37 }
 0x1b9   :  { %v2841_v46 = vpop.f32.mrf.mxu0  ;;  %3167 = vmatmul.mubr.bf16.vlgmr.msra.gmra.mxu0 %v4550_v8  ;;  %v4397_v8 = vld [vmem:[#allocation5 + $0xb40] ss:$28 sps:$4 sm:$0xff]  }
 0x1ba   :  { %3207 = vmatmul.mubr.bf16.vlgmr.msra.gmra.mxu1 %v4568_v18  ;;  %v2842_v49 = vadd.f32 %v2841_v46, %v2801_v42  ;;  %3806 = vmatpush3.bf16.msra.mxu0 %v4393_v43  ;;  %v4398_v18 = vld [vmem:[#allocation5 + $0xb08] ss:$28 sps:$4 sm:$0xff]  }
 0x1bb   :  { %3821 = vmatprep.mubr.msk.bf16.mxu0 %vm4496_vm0, %v4495_v37  ;;  %v2843_v51 = vpop.f32.mrf.mxu0  ;;  %3807 = vmatprep.subr.bf16.mxu0 %v4495_v37 }
 0x1bc   :  { %v2844_v53 = vadd.f32 %v2843_v51, %v2803_v47 }
 0x1bd   :  { %v2845_v54 = vpop.f32.mrf.mxu0 }
 0x1be   :  { %3808 = vmatpush3.bf16.msra.mxu0 %v4394_v50 }
 0x1bf   :  { %v2846_v55 = vpop.f32.mrf.mxu0  ;;  %3809 = vmatprep.subr.bf16.mxu0 %v4495_v37 }
 0x1c2   :  { %3810 = vmatpush3.bf16.msra.mxu0 %v4395_v17 }
 0x1c3   :  { %3811 = vmatprep.subr.bf16.mxu0 %v4495_v37 }
 0x1c6   :  { %3812 = vmatpush3.bf16.msra.mxu0 %v4396_v56 }
 0x1c7   :  { %3813 = vmatprep.subr.bf16.mxu0 %v4495_v37 }
 0x1ca   :  { %3814 = vmatpush3.bf16.msra.mxu0 %v4397_v8 }
 0x1cb   :  { %3815 = vmatprep.subr.bf16.mxu0 %v4495_v37 }
 0x1ce   :  { %3816 = vmatpush3.bf16.msra.mxu0 %v4398_v18 }
 0x1cf   :  { %3817 = vmatprep.subr.bf16.mxu0 %v4495_v37 }
 0x1d2   :  { %3818 = vmatpush3.bf16.msra.mxu0 %v4399_v57 }
 0x1d3   :  { %3819 = vmatprep.subr.bf16.mxu0 %v4495_v37  ;;  %v3282_v37 = vrot.slane %v4608_v23, %v544_v20 }
 0x1d6   :  { %3820 = vmatpush3.bf16.msra.mxu0 %v4400_v58 }
 0x1d9   :  { %v2923_v61 = vpop.f32.mrf.mxu0  ;;  %3822 = vmatmul.mubr.bf16.vlgmr.msra.gmra.mxu0 %v4604_v16 }
 0x1da   :  { %v2882_v60 = vpop.f32.mrf.mxu1 }
 0x1db   :  { %v2883_v62 = vadd.f32 %v2882_v60, %v2842_v49  ;;  %v2925_v1 = vpop.f32.mrf.mxu0 }
 0x1dc   :  { %v2884_v63 = vpop.f32.mrf.mxu1 }
 0x1dd   :  { %v2924_v2 = vadd.f32 %v2923_v61, %v2883_v62  ;;  %v2885_v4 = vadd.f32 %v2884_v63, %v2844_v53  ;;  %v2927_v5 = vpop.f32.mrf.mxu0  ;;  %v3286_v53 = vrot.slane %v4608_v23, %v548_v21 }
 0x1de   :  { %v2886_v6 = vpop.f32.mrf.mxu1 }
 0x1df   :  { %v3256_v9 = vmax.f32 %v2924_v2, 0.0  ;;  %v2926_v10 = vadd.f32 %v2925_v1, %v2885_v4  ;;  %v2928_v12 = vpop.f32.mrf.mxu0  ;;  %v552_v4 = vsub.s32 6, %v4580_v14  ;;  %v3729_v14 = vld [vmem:[#allocation2] ss:$0 sm:$0xff] }
 0x1e0   :  { %v2887_v45 = vpop.f32.mrf.mxu1 }
 0x1e1   :  { %v3300_v7 = vmul.f32 %v3274_v3, %v3256_v9  ;;  %v3257_v13 = vmax.f32 %v2926_v10, 0.0  ;;  %v553_v5 = vrot.slane %v4583_v35, %v552_v4 }
 0x1e3   :  { %v3306_v15 = vadd.f32 %v4620_v44, %v3300_v7  ;;  %v3301_v16 = vmul.f32 %v3278_v11, %v3257_v13 }
 0x1e5   :  { %v3307_v19 = vadd.f32 %v3306_v15, %v3301_v16  ;;  %v3290_v15 = vrot.slane %v4608_v23, %v552_v4 }
 0x219   :  { %v2964_v52 = vpop.f32.mrf.mxu0 }
 0x21a   :  { %v3005_v36 = vpop.f32.mrf.mxu1  ;;  %v2965_v26 = vadd.f32 %v2964_v52, %v545_v24 }
 0x21b   :  { %v2966_v27 = vpop.f32.mrf.mxu0 }
 0x21c   :  { %v3007_v28 = vpop.f32.mrf.mxu1  ;;  %v2967_v29 = vadd.f32 %v2966_v27, %v549_v25  ;;  %v3006_v59 = vadd.f32 %v3005_v36, %v2965_v26 }
 0x21d   :  { %v2968_v30 = vpop.f32.mrf.mxu0 }
 0x21e   :  { %v3009_v31 = vpop.f32.mrf.mxu1  ;;  %v3008_v44 = vadd.f32 %v3007_v28, %v2967_v29 }
 0x21f   :  { %v2969_v32 = vpop.f32.mrf.mxu0 }
 0x220   :  { %v3010_v33 = vpop.f32.mrf.mxu1 }
 0x23a   :  { %v3087_v34 = vpop.f32.mrf.mxu1 }
 0x23c   :  { %v3089_v38 = vpop.f32.mrf.mxu1 }
 0x23e   :  { %v3091_v48 = vpop.f32.mrf.mxu1 }
 0x240   :  { %v3092_v0 = vpop.f32.mrf.mxu1 }
 0x259   :  { %v3046_v39 = vpop.f32.mrf.mxu0 }
 0x25a   :  { %v3746_v40 = vpop.f32.mrf.mxu1  ;;  %v3047_v41 = vadd.f32 %v3046_v39, %v3006_v59 }
 0x25b   :  { %v3048_v22 = vpop.f32.mrf.mxu0 }
 0x25c   :  { %v3747_v43 = vpop.f32.mrf.mxu1  ;;  %v3088_v42 = vadd.f32 %v3087_v34, %v3047_v41  ;;  %v3049_v46 = vadd.f32 %v3048_v22, %v3008_v44 }
 0x25d   :  { %v3050_v47 = vpop.f32.mrf.mxu0  ;;  %v3748_v6 = vadd.f32 %v3747_v43, %v3746_v40 }
 0x25e   :  { %v3749_v49 = vpop.f32.mrf.mxu1  ;;  %v3258_v50 = vmax.f32 %v3088_v42, 0.0  ;;  %v3090_v51 = vadd.f32 %v3089_v38, %v3049_v46 }
 0x25f   :  { %v3051_v54 = vpop.f32.mrf.mxu0  ;;  %v3129_v10 = vadd.f32 %v3748_v6, %v553_v5 }
 0x260   :  { %v3750_v17 = vpop.f32.mrf.mxu1  ;;  %v3302_v55 = vmul.f32 %v3282_v37, %v3258_v50  ;;  %v3259_v56 = vmax.f32 %v3090_v51, 0.0 }
 0x262   :  { %v3303_v8 = vmul.f32 %v3286_v53, %v3259_v56  ;;  %v3308_v18 = vadd.f32 %v3307_v19, %v3302_v55 }
 0x264   :  { %v3309_v57 = vadd.f32 %v3308_v18, %v3303_v8 }
 0x279   :  { %v3768_v58 = vpop.f32.mrf.mxu0 }
 0x27a   :  { %v3790_v60 = vpop.f32.mrf.mxu1 }
 0x27b   :  { %v3769_v61 = vpop.f32.mrf.mxu0 }
 0x27c   :  { %v3791_v62 = vpop.f32.mrf.mxu1  ;;  %v3770_v9 = vadd.f32 %v3769_v61, %v3768_v58 }
 0x27d   :  { %v3771_v63 = vpop.f32.mrf.mxu0  ;;  %v3792_v12 = vadd.f32 %v3791_v62, %v3790_v60 }
 0x27e   :  { %v3793_v1 = vpop.f32.mrf.mxu1  ;;  %v3169_v11 = vadd.f32 %v3770_v9, %v3129_v10 }
 0x27f   :  { %v3772_v2 = vpop.f32.mrf.mxu0 }
 0x280   :  { %v3794_v3 = vpop.f32.mrf.mxu1  ;;  %v3209_v45 = vadd.f32 %v3792_v12, %v3169_v11 }
 0x299   :  { %v3248_v7 = vpop.f32.mrf.mxu0 }
 0x29a   :  { %v3249_v13 = vadd.f32 %v3248_v7, %v3209_v45 }
 0x29b   :  { %v3823_v16 = vpop.f32.mrf.mxu0 }
 0x29c   :  { %v3260_v19 = vmax.f32 %v3249_v13, 0.0 }
 0x29d   :  { %v3251_v20 = vpop.f32.mrf.mxu0 }
 0x29e   :  { %v3304_v21 = vmul.f32 %v3290_v15, %v3260_v19 }
 0x29f   :  { %v3824_v24 = vpop.f32.mrf.mxu0 }
 0x2a0   :  { %v3310_v25 = vadd.f32 %v3309_v57, %v3304_v21 }
 0x2a2   :  { %3311 = vadd.xlane.f32.xlu0 %v3310_v25 }
 0x32b   :  { %v3312_v52 = vpop.xlane.xlu0 %3311 }
 0x32c   :  { %v3320_v35 = vadd.f32 %v3729_v14, %v3312_v52 }
 0x32e   :  { %3322 = vst.msk [vmem:[%s4659_s5] sm:$0xff] %vm3321_vm1, %v3320_v35 }
 0x32f   :  { %3327 = vsyncpa [#allocation4], 1 }
 0x330   :  { %3328 = vsyncpa [#allocation6], 1 }
 0x331   :  { %3329 = vsyncpa [#allocation9], 1 }

</bundles_post_ra>
